<compile_context>
chip_gen: v7x
topology: tpu7x:2x2x1
jax: 0.10.0
libtpu: 0.0.40
codegen_flags: <defaults>
</compile_context>

<pallas_src>
import functools

import jax
import jax.numpy as jnp
from jax.experimental import pallas as pl
from jax.experimental.pallas import tpu as pltpu


# ------------------------------ fused kernel --------------------------------

def fused_inverted_residual_kernel(x_ref, we_ref, wp_ref, wd_ref, b_ref, o_ref,
                                   *, H, W, cin, hidden, oup, G):
    HW = H * W
    GC, GH, GO = G * cin, G * hidden, G * oup

    x = x_ref[0]                                    # (GC, HW) f32
    bias = b_ref[...]                               # (2*GH + GO, 1)
    b1 = bias[0:GH]
    b2 = bias[GH:2 * GH]
    b3 = bias[2 * GH:2 * GH + GO]

    # ---- 1x1 expand (BN1 scale folded into we, bias-initialized acc) + ReLU6 ----
    y = jnp.broadcast_to(b1, (GH, HW))
    for c in range(GC):                             # tiny K -> VPU outer-product MACs
        y = y + we_ref[c] * x[c:c + 1, :]           # (GH,1) * (1,HW)
    y = jnp.clip(y, 0.0, 6.0)

    # ---- 3x3 depthwise, stride 1, pad 1 (BN2 folded), shift-separable ----
    lane = jax.lax.broadcasted_iota(jnp.int32, (1, HW), 1)
    if (W & (W - 1)) == 0:                          # power-of-two fast path
        h_idx = lane >> (W.bit_length() - 1)
        w_idx = lane & (W - 1)
    else:
        h_idx = lane // W
        w_idx = lane - h_idx * W
    w_lo = w_idx >= 1                               # column w-1 exists
    w_hi = w_idx <= W - 2                           # column w+1 exists
    h_lo = h_idx >= 1                               # row h-1 exists
    h_hi = h_idx <= H - 2                           # row h+1 exists

    # Horizontal (w +/- 1) taps: two lane-offset windows of a doubled buffer.
    # ycat[:, a:a+HW][p] == y[(a+p) % HW]; wrapped entries are masked.
    ycat = jnp.concatenate([y, y], axis=1)                     # (GH, 2*HW)
    c_m1 = jnp.where(w_lo, ycat[:, HW - 1:2 * HW - 1], 0.0)    # y[h, w-1]
    c_p1 = jnp.where(w_hi, ycat[:, 1:HW + 1], 0.0)             # y[h, w+1]

    # Per-filter-row sums  r_dh(h, w) = sum_dw wd[dh+1, dw+1] * y[h, w+dw]
    r_m1 = wd_ref[0, 0] * c_m1 + wd_ref[0, 1] * y + wd_ref[0, 2] * c_p1
    r_0 = b2 + wd_ref[1, 0] * c_m1 + wd_ref[1, 1] * y + wd_ref[1, 2] * c_p1
    r_p1 = wd_ref[2, 0] * c_m1 + wd_ref[2, 1] * y + wd_ref[2, 2] * c_p1

    # Vertical (h +/- 1) shifts of the row sums: one doubled buffer gives BOTH
    # +/-W lane windows (out-of-image wrap lands in the masked region).
    rcat = jnp.concatenate([r_p1, r_m1], axis=1)               # (GH, 2*HW)
    z = r_0
    z = z + jnp.where(h_lo, rcat[:, HW - W:2 * HW - W], 0.0)   # r_m1 at row h-1
    z = z + jnp.where(h_hi, rcat[:, W:HW + W], 0.0)            # r_p1 at row h+1
    z = jnp.clip(z, 0.0, 6.0)

    # ---- 1x1 project (BN3 folded, bias-init) + ReLU6 + identity residual ----
    o = jnp.broadcast_to(b3, (GO, HW))
    for c in range(GH):
        o = o + wp_ref[c] * z[c:c + 1, :]           # (GO,1) * (1,HW)
    o_ref[0] = jnp.clip(o, 0.0, 6.0) + x            # cin == oup: identity residual


# -------------------------------- wrapper ------------------------------------

def _rep_spec(arr):
    zeros = (0,) * arr.ndim
    return pl.BlockSpec(arr.shape, lambda g, _z=zeros: _z)


def _block_diag(w, G):
    """(r, c) per-image weight -> (G*r, G*c) block-diagonal group weight (exact)."""
    r, c = w.shape
    out = jnp.zeros((G, r, G, c), w.dtype)
    for i in range(G):
        out = out.at[i, :, i, :].set(w)
    return out.reshape(G * r, G * c)


def inverted_residual_v1(x_nchw, p, *, images_per_step=None):
    # Only the stride=1 / inp==oup identity branch is implemented (config under test).
    # TODO(synk): stride=2 / non-identity branch (no residual, subsampled depthwise).
    N, cin, H, W = x_nchw.shape
    HW = H * W
    hidden = p["w_expand"].shape[1]
    oup = p["w_proj"].shape[1]
    assert cin == oup, "identity branch requires inp == oup"

    # Batch fold: G images per grid step.  Default folds the whole (small) batch ->
    # one grid step on single-TC v5e/v6e and full-tile stores.  On v7x use
    # images_per_step=1 so the two TensorCores split the batch ("parallel" axis).
    G = N if images_per_step is None else images_per_step
    assert N % G == 0

    # Fold the eval-mode BN scales into the conv weights; only biases reach the
    # kernel (used as accumulator initializers).
    we = p["w_expand"] * p["scale1"][None, :]            # (cin, hidden)
    wd = p["w_dw"] * p["scale2"][None, None, :]          # (3, 3, hidden)
    wp = p["w_proj"] * p["scale3"][None, :]              # (hidden, oup)

    # Group layouts: channels of the G images stack on sublanes, H*W stays lane-dense.
    we_bd = _block_diag(we, G)[..., None]                # (G*cin, G*hidden, 1)
    wp_bd = _block_diag(wp, G)[..., None]                # (G*hidden, G*oup, 1)
    wd_t = jnp.tile(wd, (1, 1, G))[..., None]            # (3, 3, G*hidden, 1)
    bias_pack = jnp.concatenate([
        jnp.tile(p["bias1"], G), jnp.tile(p["bias2"], G), jnp.tile(p["bias3"], G),
    ])[:, None]                                          # (2*G*hidden + G*oup, 1)

    x = x_nchw.reshape(N // G, G * cin, HW)              # free reshape, stays NCHW

    kernel = functools.partial(fused_inverted_residual_kernel,
                               H=H, W=W, cin=cin, hidden=hidden, oup=oup, G=G)

    flops = 2 * N * HW * (cin * hidden + 9 * hidden + hidden * oup)
    bytes_accessed = 4 * (x.size + N * oup * HW + we_bd.size + wp_bd.size
                          + wd_t.size + bias_pack.size)

    out = pl.pallas_call(
        kernel,
        out_shape=jax.ShapeDtypeStruct((N // G, G * oup, HW), jnp.float32),
        grid=(N // G,),
        in_specs=[
            pl.BlockSpec((1, G * cin, HW), lambda g: (g, 0, 0)),
            _rep_spec(we_bd), _rep_spec(wp_bd), _rep_spec(wd_t), _rep_spec(bias_pack),
        ],
        out_specs=pl.BlockSpec((1, G * oup, HW), lambda g: (g, 0, 0)),
        compiler_params=pltpu.CompilerParams(dimension_semantics=("parallel",)),
        cost_estimate=pl.CostEstimate(flops=flops, transcendentals=0,
                                      bytes_accessed=bytes_accessed),
    )(x, we_bd, wp_bd, wd_t, bias_pack)
    return out.reshape(N, oup, H, W)


# ----------------------------- param creation --------------------------------

def fold_bn(gamma, beta, mean, var, eps=1e-5):
    scale = gamma / jnp.sqrt(var + eps)
    bias = beta - mean * scale
    return scale, bias


def make_params(key, inp, oup, expand_ratio):
    hidden = round(inp * expand_ratio)
    ks = jax.random.split(key, 6)

    def bn(k, c):
        k1, k2, k3, k4 = jax.random.split(k, 4)
        gamma = jax.random.uniform(k1, (c,), minval=0.5, maxval=1.5)
        beta = 0.1 * jax.random.normal(k2, (c,))
        mean = 0.1 * jax.random.normal(k3, (c,))
        var = jax.random.uniform(k4, (c,), minval=0.5, maxval=1.5)
        return fold_bn(gamma, beta, mean, var)

    w_expand = 0.3 * jax.random.normal(ks[0], (inp, hidden))       # (Cin, hidden)
    w_dw = 0.3 * jax.random.normal(ks[1], (3, 3, hidden))          # (kh, kw, hidden)
    w_proj = 0.3 * jax.random.normal(ks[2], (hidden, oup))         # (hidden, Cout)
    s1, b1 = bn(ks[3], hidden)
    s2, b2 = bn(ks[4], hidden)
    s3, b3 = bn(ks[5], oup)

    f32 = lambda a: a.astype(jnp.float32)
    return dict(w_expand=f32(w_expand), w_dw=f32(w_dw), w_proj=f32(w_proj),
                scale1=f32(s1), bias1=f32(b1),
                scale2=f32(s2), bias2=f32(b2),
                scale3=f32(s3), bias3=f32(b3))


# ------------------------------ JAX reference ---------------------------------

def reference(x_nchw, p):
    hp = jax.lax.Precision.HIGHEST
    x = jnp.transpose(x_nchw, (0, 2, 3, 1))              # NHWC
    H, W = x.shape[1], x.shape[2]
    y = jnp.einsum("nhwc,cd->nhwd", x, p["w_expand"], precision=hp)
    y = jnp.clip(y * p["scale1"] + p["bias1"], 0.0, 6.0)
    yp = jnp.pad(y, ((0, 0), (1, 1), (1, 1), (0, 0)))
    acc = jnp.zeros_like(y)
    for kh in range(3):
        for kw in range(3):
            acc = acc + yp[:, kh:kh + H, kw:kw + W, :] * p["w_dw"][kh, kw, :]
    z = jnp.clip(acc * p["scale2"] + p["bias2"], 0.0, 6.0)
    o = jnp.einsum("nhwc,cd->nhwd", z, p["w_proj"], precision=hp)
    o = jnp.clip(o * p["scale3"] + p["bias3"], 0.0, 6.0) + x
    return jnp.transpose(o, (0, 3, 1, 2))


# ---------------------------------- main ---------------------------------------

if __name__ == "__main__":
    inp, oup, stride, expand_ratio = 4, 4, 1, 4          # identity branch active
    N, H, W = 2, 16, 16

    key = jax.random.PRNGKey(0)
    kx, kp = jax.random.split(key)
    x = jax.random.normal(kx, (N, inp, H, W), dtype=jnp.float32)
    params = make_params(kp, inp, oup, expand_ratio)

    fwd = jax.jit(inverted_residual_v1)
    out = jax.block_until_ready(fwd(x, params))
    ref = jax.block_until_ready(reference(x, params))

    assert out.shape == (N, oup, H, W)
    err = float(jnp.max(jnp.abs(out - ref)))
    assert err < 1e-3, f"max abs error too large: {err}"
    print("KERNEL_OK")
</pallas_src>

<mosaic_0001>
module attributes {stable_mosaic.version = 11 : i64} {
  func.func @fused_inverted_residual_kernel(%arg0: i32, %arg1: memref<1x8x256xf32, #tpu.memory_space<vmem>>, %arg2: memref<8x32x1xf32, #tpu.memory_space<vmem>>, %arg3: memref<32x8x1xf32, #tpu.memory_space<vmem>>, %arg4: memref<3x3x32x1xf32, #tpu.memory_space<vmem>>, %arg5: memref<72x1xf32, #tpu.memory_space<vmem>>, %arg6: memref<1x8x256xf32, #tpu.memory_space<vmem>>) attributes {dimension_semantics = [#tpu.dimension_semantics<parallel>], iteration_bounds = array<i64: 1>, scalar_prefetch = 0 : i64, scratch_operands = 0 : i64, tpu.core_type = #tpu.core_type<tc>, window_params = [{transform_indices = @transform_0, window_bounds = array<i64: 1, 8, 256>}, {pipeline_mode = #tpu.pipeline_mode<synchronous>, transform_indices = @transform_1, window_bounds = array<i64: 8, 32, 1>}, {pipeline_mode = #tpu.pipeline_mode<synchronous>, transform_indices = @transform_2, window_bounds = array<i64: 32, 8, 1>}, {pipeline_mode = #tpu.pipeline_mode<synchronous>, transform_indices = @transform_3, window_bounds = array<i64: 3, 3, 32, 1>}, {pipeline_mode = #tpu.pipeline_mode<synchronous>, transform_indices = @transform_4, window_bounds = array<i64: 72, 1>}, {transform_indices = @transform_5, window_bounds = array<i64: 1, 8, 256>}]} {
    %c0 = arith.constant 0 : index
    %c0_0 = arith.constant 0 : index
    %c0_1 = arith.constant 0 : index
    %0 = vector.load %arg1[%c0, %c0_0, %c0_1] : memref<1x8x256xf32, #tpu.memory_space<vmem>>, vector<1x8x256xf32>
    %1 = vector.shape_cast %0 : vector<1x8x256xf32> to vector<8x256xf32>
    %c0_2 = arith.constant 0 : index
    %c0_3 = arith.constant 0 : index
    %2 = vector.load %arg5[%c0_2, %c0_3] : memref<72x1xf32, #tpu.memory_space<vmem>>, vector<72x1xf32>
    %3 = vector.extract_strided_slice %2 {offsets = [0, 0], sizes = [32, 1], strides = [1, 1]} : vector<72x1xf32> to vector<32x1xf32>
    %4 = vector.extract_strided_slice %2 {offsets = [32, 0], sizes = [32, 1], strides = [1, 1]} : vector<72x1xf32> to vector<32x1xf32>
    %5 = vector.extract_strided_slice %2 {offsets = [64, 0], sizes = [8, 1], strides = [1, 1]} : vector<72x1xf32> to vector<8x1xf32>
    %6 = vector.shape_cast %3 : vector<32x1xf32> to vector<32x1xf32>
    %7 = vector.broadcast %6 : vector<32x1xf32> to vector<32x256xf32>
    %c0_4 = arith.constant 0 : index
    %c0_5 = arith.constant 0 : index
    %c0_6 = arith.constant 0 : index
    %8 = vector.load %arg2[%c0_4, %c0_5, %c0_6] : memref<8x32x1xf32, #tpu.memory_space<vmem>>, vector<1x32x1xf32>
    %9 = vector.shape_cast %8 : vector<1x32x1xf32> to vector<32x1xf32>
    %10 = vector.extract_strided_slice %1 {offsets = [0, 0], sizes = [1, 256], strides = [1, 1]} : vector<8x256xf32> to vector<1x256xf32>
    %11 = vector.broadcast %9 : vector<32x1xf32> to vector<32x256xf32>
    %12 = vector.broadcast %10 : vector<1x256xf32> to vector<32x256xf32>
    %13 = arith.mulf %11, %12 : vector<32x256xf32>
    %14 = arith.addf %7, %13 : vector<32x256xf32>
    %c1 = arith.constant 1 : index
    %c0_7 = arith.constant 0 : index
    %c0_8 = arith.constant 0 : index
    %15 = vector.load %arg2[%c1, %c0_7, %c0_8] : memref<8x32x1xf32, #tpu.memory_space<vmem>>, vector<1x32x1xf32>
    %16 = vector.shape_cast %15 : vector<1x32x1xf32> to vector<32x1xf32>
    %17 = vector.extract_strided_slice %1 {offsets = [1, 0], sizes = [1, 256], strides = [1, 1]} : vector<8x256xf32> to vector<1x256xf32>
    %18 = vector.broadcast %16 : vector<32x1xf32> to vector<32x256xf32>
    %19 = vector.broadcast %17 : vector<1x256xf32> to vector<32x256xf32>
    %20 = arith.mulf %18, %19 : vector<32x256xf32>
    %21 = arith.addf %14, %20 : vector<32x256xf32>
    %c2 = arith.constant 2 : index
    %c0_9 = arith.constant 0 : index
    %c0_10 = arith.constant 0 : index
    %22 = vector.load %arg2[%c2, %c0_9, %c0_10] : memref<8x32x1xf32, #tpu.memory_space<vmem>>, vector<1x32x1xf32>
    %23 = vector.shape_cast %22 : vector<1x32x1xf32> to vector<32x1xf32>
    %24 = vector.extract_strided_slice %1 {offsets = [2, 0], sizes = [1, 256], strides = [1, 1]} : vector<8x256xf32> to vector<1x256xf32>
    %25 = vector.broadcast %23 : vector<32x1xf32> to vector<32x256xf32>
    %26 = vector.broadcast %24 : vector<1x256xf32> to vector<32x256xf32>
    %27 = arith.mulf %25, %26 : vector<32x256xf32>
    %28 = arith.addf %21, %27 : vector<32x256xf32>
    %c3 = arith.constant 3 : index
    %c0_11 = arith.constant 0 : index
    %c0_12 = arith.constant 0 : index
    %29 = vector.load %arg2[%c3, %c0_11, %c0_12] : memref<8x32x1xf32, #tpu.memory_space<vmem>>, vector<1x32x1xf32>
    %30 = vector.shape_cast %29 : vector<1x32x1xf32> to vector<32x1xf32>
    %31 = vector.extract_strided_slice %1 {offsets = [3, 0], sizes = [1, 256], strides = [1, 1]} : vector<8x256xf32> to vector<1x256xf32>
    %32 = vector.broadcast %30 : vector<32x1xf32> to vector<32x256xf32>
    %33 = vector.broadcast %31 : vector<1x256xf32> to vector<32x256xf32>
    %34 = arith.mulf %32, %33 : vector<32x256xf32>
    %35 = arith.addf %28, %34 : vector<32x256xf32>
    %c4 = arith.constant 4 : index
    %c0_13 = arith.constant 0 : index
    %c0_14 = arith.constant 0 : index
    %36 = vector.load %arg2[%c4, %c0_13, %c0_14] : memref<8x32x1xf32, #tpu.memory_space<vmem>>, vector<1x32x1xf32>
    %37 = vector.shape_cast %36 : vector<1x32x1xf32> to vector<32x1xf32>
    %38 = vector.extract_strided_slice %1 {offsets = [4, 0], sizes = [1, 256], strides = [1, 1]} : vector<8x256xf32> to vector<1x256xf32>
    %39 = vector.broadcast %37 : vector<32x1xf32> to vector<32x256xf32>
    %40 = vector.broadcast %38 : vector<1x256xf32> to vector<32x256xf32>
    %41 = arith.mulf %39, %40 : vector<32x256xf32>
    %42 = arith.addf %35, %41 : vector<32x256xf32>
    %c5 = arith.constant 5 : index
    %c0_15 = arith.constant 0 : index
    %c0_16 = arith.constant 0 : index
    %43 = vector.load %arg2[%c5, %c0_15, %c0_16] : memref<8x32x1xf32, #tpu.memory_space<vmem>>, vector<1x32x1xf32>
    %44 = vector.shape_cast %43 : vector<1x32x1xf32> to vector<32x1xf32>
    %45 = vector.extract_strided_slice %1 {offsets = [5, 0], sizes = [1, 256], strides = [1, 1]} : vector<8x256xf32> to vector<1x256xf32>
    %46 = vector.broadcast %44 : vector<32x1xf32> to vector<32x256xf32>
    %47 = vector.broadcast %45 : vector<1x256xf32> to vector<32x256xf32>
    %48 = arith.mulf %46, %47 : vector<32x256xf32>
    %49 = arith.addf %42, %48 : vector<32x256xf32>
    %c6 = arith.constant 6 : index
    %c0_17 = arith.constant 0 : index
    %c0_18 = arith.constant 0 : index
    %50 = vector.load %arg2[%c6, %c0_17, %c0_18] : memref<8x32x1xf32, #tpu.memory_space<vmem>>, vector<1x32x1xf32>
    %51 = vector.shape_cast %50 : vector<1x32x1xf32> to vector<32x1xf32>
    %52 = vector.extract_strided_slice %1 {offsets = [6, 0], sizes = [1, 256], strides = [1, 1]} : vector<8x256xf32> to vector<1x256xf32>
    %53 = vector.broadcast %51 : vector<32x1xf32> to vector<32x256xf32>
    %54 = vector.broadcast %52 : vector<1x256xf32> to vector<32x256xf32>
    %55 = arith.mulf %53, %54 : vector<32x256xf32>
    %56 = arith.addf %49, %55 : vector<32x256xf32>
    %c7 = arith.constant 7 : index
    %c0_19 = arith.constant 0 : index
    %c0_20 = arith.constant 0 : index
    %57 = vector.load %arg2[%c7, %c0_19, %c0_20] : memref<8x32x1xf32, #tpu.memory_space<vmem>>, vector<1x32x1xf32>
    %58 = vector.shape_cast %57 : vector<1x32x1xf32> to vector<32x1xf32>
    %59 = vector.extract_strided_slice %1 {offsets = [7, 0], sizes = [1, 256], strides = [1, 1]} : vector<8x256xf32> to vector<1x256xf32>
    %60 = vector.broadcast %58 : vector<32x1xf32> to vector<32x256xf32>
    %61 = vector.broadcast %59 : vector<1x256xf32> to vector<32x256xf32>
    %62 = arith.mulf %60, %61 : vector<32x256xf32>
    %63 = arith.addf %56, %62 : vector<32x256xf32>
    %cst = arith.constant 0.000000e+00 : f32
    %cst_21 = arith.constant 6.000000e+00 : f32
    %64 = vector.broadcast %cst : f32 to vector<32x256xf32>
    %65 = arith.maximumf %64, %63 : vector<32x256xf32>
    %66 = vector.broadcast %cst_21 : f32 to vector<32x256xf32>
    %67 = arith.minimumf %66, %65 : vector<32x256xf32>
    %68 = tpu.iota {dimensions = array<i32: 1>} : vector<1x256xi32>
    %c4_i32 = arith.constant 4 : i32
    %69 = vector.broadcast %c4_i32 : i32 to vector<1x256xi32>
    %70 = arith.shrsi %68, %69 : vector<1x256xi32>
    %c15_i32 = arith.constant 15 : i32
    %71 = vector.broadcast %c15_i32 : i32 to vector<1x256xi32>
    %72 = arith.andi %68, %71 : vector<1x256xi32>
    %c1_i32 = arith.constant 1 : i32
    %73 = vector.broadcast %c1_i32 : i32 to vector<1x256xi32>
    %74 = arith.cmpi sge, %72, %73 : vector<1x256xi32>
    %c14_i32 = arith.constant 14 : i32
    %75 = vector.broadcast %c14_i32 : i32 to vector<1x256xi32>
    %76 = arith.cmpi sle, %72, %75 : vector<1x256xi32>
    %c1_i32_22 = arith.constant 1 : i32
    %77 = vector.broadcast %c1_i32_22 : i32 to vector<1x256xi32>
    %78 = arith.cmpi sge, %70, %77 : vector<1x256xi32>
    %c14_i32_23 = arith.constant 14 : i32
    %79 = vector.broadcast %c14_i32_23 : i32 to vector<1x256xi32>
    %80 = arith.cmpi sle, %70, %79 : vector<1x256xi32>
    %81 = tpu.concatenate %67, %67 in 1 : vector<32x256xf32>, vector<32x256xf32> -> vector<32x512xf32>
    %82 = vector.extract_strided_slice %81 {offsets = [0, 255], sizes = [32, 256], strides = [1, 1]} : vector<32x512xf32> to vector<32x256xf32>
    %cst_24 = arith.constant 0.000000e+00 : f32
    %83 = vector.shape_cast %74 : vector<1x256xi1> to vector<1x256xi1>
    %84 = vector.broadcast %83 : vector<1x256xi1> to vector<32x256xi1>
    %85 = vector.broadcast %cst_24 : f32 to vector<32x256xf32>
    %86 = arith.select %84, %82, %85 : vector<32x256xi1>, vector<32x256xf32>
    %87 = vector.extract_strided_slice %81 {offsets = [0, 1], sizes = [32, 256], strides = [1, 1]} : vector<32x512xf32> to vector<32x256xf32>
    %cst_25 = arith.constant 0.000000e+00 : f32
    %88 = vector.shape_cast %76 : vector<1x256xi1> to vector<1x256xi1>
    %89 = vector.broadcast %88 : vector<1x256xi1> to vector<32x256xi1>
    %90 = vector.broadcast %cst_25 : f32 to vector<32x256xf32>
    %91 = arith.select %89, %87, %90 : vector<32x256xi1>, vector<32x256xf32>
    %c0_26 = arith.constant 0 : index
    %c0_27 = arith.constant 0 : index
    %c0_28 = arith.constant 0 : index
    %c0_29 = arith.constant 0 : index
    %92 = vector.load %arg4[%c0_26, %c0_27, %c0_28, %c0_29] : memref<3x3x32x1xf32, #tpu.memory_space<vmem>>, vector<1x1x32x1xf32>
    %93 = vector.shape_cast %92 : vector<1x1x32x1xf32> to vector<32x1xf32>
    %94 = vector.broadcast %93 : vector<32x1xf32> to vector<32x256xf32>
    %95 = arith.mulf %94, %86 : vector<32x256xf32>
    %c0_30 = arith.constant 0 : index
    %c1_31 = arith.constant 1 : index
    %c0_32 = arith.constant 0 : index
    %c0_33 = arith.constant 0 : index
    %96 = vector.load %arg4[%c0_30, %c1_31, %c0_32, %c0_33] : memref<3x3x32x1xf32, #tpu.memory_space<vmem>>, vector<1x1x32x1xf32>
    %97 = vector.shape_cast %96 : vector<1x1x32x1xf32> to vector<32x1xf32>
    %98 = vector.broadcast %97 : vector<32x1xf32> to vector<32x256xf32>
    %99 = arith.mulf %98, %67 : vector<32x256xf32>
    %100 = arith.addf %95, %99 : vector<32x256xf32>
    %c0_34 = arith.constant 0 : index
    %c2_35 = arith.constant 2 : index
    %c0_36 = arith.constant 0 : index
    %c0_37 = arith.constant 0 : index
    %101 = vector.load %arg4[%c0_34, %c2_35, %c0_36, %c0_37] : memref<3x3x32x1xf32, #tpu.memory_space<vmem>>, vector<1x1x32x1xf32>
    %102 = vector.shape_cast %101 : vector<1x1x32x1xf32> to vector<32x1xf32>
    %103 = vector.broadcast %102 : vector<32x1xf32> to vector<32x256xf32>
    %104 = arith.mulf %103, %91 : vector<32x256xf32>
    %105 = arith.addf %100, %104 : vector<32x256xf32>
    %c1_38 = arith.constant 1 : index
    %c0_39 = arith.constant 0 : index
    %c0_40 = arith.constant 0 : index
    %c0_41 = arith.constant 0 : index
    %106 = vector.load %arg4[%c1_38, %c0_39, %c0_40, %c0_41] : memref<3x3x32x1xf32, #tpu.memory_space<vmem>>, vector<1x1x32x1xf32>
    %107 = vector.shape_cast %106 : vector<1x1x32x1xf32> to vector<32x1xf32>
    %108 = vector.broadcast %107 : vector<32x1xf32> to vector<32x256xf32>
    %109 = arith.mulf %108, %86 : vector<32x256xf32>
    %110 = vector.broadcast %4 : vector<32x1xf32> to vector<32x256xf32>
    %111 = arith.addf %110, %109 : vector<32x256xf32>
    %c1_42 = arith.constant 1 : index
    %c1_43 = arith.constant 1 : index
    %c0_44 = arith.constant 0 : index
    %c0_45 = arith.constant 0 : index
    %112 = vector.load %arg4[%c1_42, %c1_43, %c0_44, %c0_45] : memref<3x3x32x1xf32, #tpu.memory_space<vmem>>, vector<1x1x32x1xf32>
    %113 = vector.shape_cast %112 : vector<1x1x32x1xf32> to vector<32x1xf32>
    %114 = vector.broadcast %113 : vector<32x1xf32> to vector<32x256xf32>
    %115 = arith.mulf %114, %67 : vector<32x256xf32>
    %116 = arith.addf %111, %115 : vector<32x256xf32>
    %c1_46 = arith.constant 1 : index
    %c2_47 = arith.constant 2 : index
    %c0_48 = arith.constant 0 : index
    %c0_49 = arith.constant 0 : index
    %117 = vector.load %arg4[%c1_46, %c2_47, %c0_48, %c0_49] : memref<3x3x32x1xf32, #tpu.memory_space<vmem>>, vector<1x1x32x1xf32>
    %118 = vector.shape_cast %117 : vector<1x1x32x1xf32> to vector<32x1xf32>
    %119 = vector.broadcast %118 : vector<32x1xf32> to vector<32x256xf32>
    %120 = arith.mulf %119, %91 : vector<32x256xf32>
    %121 = arith.addf %116, %120 : vector<32x256xf32>
    %c2_50 = arith.constant 2 : index
    %c0_51 = arith.constant 0 : index
    %c0_52 = arith.constant 0 : index
    %c0_53 = arith.constant 0 : index
    %122 = vector.load %arg4[%c2_50, %c0_51, %c0_52, %c0_53] : memref<3x3x32x1xf32, #tpu.memory_space<vmem>>, vector<1x1x32x1xf32>
    %123 = vector.shape_cast %122 : vector<1x1x32x1xf32> to vector<32x1xf32>
    %124 = vector.broadcast %123 : vector<32x1xf32> to vector<32x256xf32>
    %125 = arith.mulf %124, %86 : vector<32x256xf32>
    %c2_54 = arith.constant 2 : index
    %c1_55 = arith.constant 1 : index
    %c0_56 = arith.constant 0 : index
    %c0_57 = arith.constant 0 : index
    %126 = vector.load %arg4[%c2_54, %c1_55, %c0_56, %c0_57] : memref<3x3x32x1xf32, #tpu.memory_space<vmem>>, vector<1x1x32x1xf32>
    %127 = vector.shape_cast %126 : vector<1x1x32x1xf32> to vector<32x1xf32>
    %128 = vector.broadcast %127 : vector<32x1xf32> to vector<32x256xf32>
    %129 = arith.mulf %128, %67 : vector<32x256xf32>
    %130 = arith.addf %125, %129 : vector<32x256xf32>
    %c2_58 = arith.constant 2 : index
    %c2_59 = arith.constant 2 : index
    %c0_60 = arith.constant 0 : index
    %c0_61 = arith.constant 0 : index
    %131 = vector.load %arg4[%c2_58, %c2_59, %c0_60, %c0_61] : memref<3x3x32x1xf32, #tpu.memory_space<vmem>>, vector<1x1x32x1xf32>
    %132 = vector.shape_cast %131 : vector<1x1x32x1xf32> to vector<32x1xf32>
    %133 = vector.broadcast %132 : vector<32x1xf32> to vector<32x256xf32>
    %134 = arith.mulf %133, %91 : vector<32x256xf32>
    %135 = arith.addf %130, %134 : vector<32x256xf32>
    %136 = tpu.concatenate %135, %105 in 1 : vector<32x256xf32>, vector<32x256xf32> -> vector<32x512xf32>
    %137 = vector.extract_strided_slice %136 {offsets = [0, 240], sizes = [32, 256], strides = [1, 1]} : vector<32x512xf32> to vector<32x256xf32>
    %cst_62 = arith.constant 0.000000e+00 : f32
    %138 = vector.shape_cast %78 : vector<1x256xi1> to vector<1x256xi1>
    %139 = vector.broadcast %138 : vector<1x256xi1> to vector<32x256xi1>
    %140 = vector.broadcast %cst_62 : f32 to vector<32x256xf32>
    %141 = arith.select %139, %137, %140 : vector<32x256xi1>, vector<32x256xf32>
    %142 = arith.addf %121, %141 : vector<32x256xf32>
    %143 = vector.extract_strided_slice %136 {offsets = [0, 16], sizes = [32, 256], strides = [1, 1]} : vector<32x512xf32> to vector<32x256xf32>
    %cst_63 = arith.constant 0.000000e+00 : f32
    %144 = vector.shape_cast %80 : vector<1x256xi1> to vector<1x256xi1>
    %145 = vector.broadcast %144 : vector<1x256xi1> to vector<32x256xi1>
    %146 = vector.broadcast %cst_63 : f32 to vector<32x256xf32>
    %147 = arith.select %145, %143, %146 : vector<32x256xi1>, vector<32x256xf32>
    %148 = arith.addf %142, %147 : vector<32x256xf32>
    %cst_64 = arith.constant 0.000000e+00 : f32
    %cst_65 = arith.constant 6.000000e+00 : f32
    %149 = vector.broadcast %cst_64 : f32 to vector<32x256xf32>
    %150 = arith.maximumf %149, %148 : vector<32x256xf32>
    %151 = vector.broadcast %cst_65 : f32 to vector<32x256xf32>
    %152 = arith.minimumf %151, %150 : vector<32x256xf32>
    %153 = vector.shape_cast %5 : vector<8x1xf32> to vector<8x1xf32>
    %154 = vector.broadcast %153 : vector<8x1xf32> to vector<8x256xf32>
    %c0_66 = arith.constant 0 : index
    %c0_67 = arith.constant 0 : index
    %c0_68 = arith.constant 0 : index
    %155 = vector.load %arg3[%c0_66, %c0_67, %c0_68] : memref<32x8x1xf32, #tpu.memory_space<vmem>>, vector<1x8x1xf32>
    %156 = vector.shape_cast %155 : vector<1x8x1xf32> to vector<8x1xf32>
    %157 = vector.extract_strided_slice %152 {offsets = [0, 0], sizes = [1, 256], strides = [1, 1]} : vector<32x256xf32> to vector<1x256xf32>
    %158 = vector.broadcast %156 : vector<8x1xf32> to vector<8x256xf32>
    %159 = vector.broadcast %157 : vector<1x256xf32> to vector<8x256xf32>
    %160 = arith.mulf %158, %159 : vector<8x256xf32>
    %161 = arith.addf %154, %160 : vector<8x256xf32>
    %c1_69 = arith.constant 1 : index
    %c0_70 = arith.constant 0 : index
    %c0_71 = arith.constant 0 : index
    %162 = vector.load %arg3[%c1_69, %c0_70, %c0_71] : memref<32x8x1xf32, #tpu.memory_space<vmem>>, vector<1x8x1xf32>
    %163 = vector.shape_cast %162 : vector<1x8x1xf32> to vector<8x1xf32>
    %164 = vector.extract_strided_slice %152 {offsets = [1, 0], sizes = [1, 256], strides = [1, 1]} : vector<32x256xf32> to vector<1x256xf32>
    %165 = vector.broadcast %163 : vector<8x1xf32> to vector<8x256xf32>
    %166 = vector.broadcast %164 : vector<1x256xf32> to vector<8x256xf32>
    %167 = arith.mulf %165, %166 : vector<8x256xf32>
    %168 = arith.addf %161, %167 : vector<8x256xf32>
    %c2_72 = arith.constant 2 : index
    %c0_73 = arith.constant 0 : index
    %c0_74 = arith.constant 0 : index
    %169 = vector.load %arg3[%c2_72, %c0_73, %c0_74] : memref<32x8x1xf32, #tpu.memory_space<vmem>>, vector<1x8x1xf32>
    %170 = vector.shape_cast %169 : vector<1x8x1xf32> to vector<8x1xf32>
    %171 = vector.extract_strided_slice %152 {offsets = [2, 0], sizes = [1, 256], strides = [1, 1]} : vector<32x256xf32> to vector<1x256xf32>
    %172 = vector.broadcast %170 : vector<8x1xf32> to vector<8x256xf32>
    %173 = vector.broadcast %171 : vector<1x256xf32> to vector<8x256xf32>
    %174 = arith.mulf %172, %173 : vector<8x256xf32>
    %175 = arith.addf %168, %174 : vector<8x256xf32>
    %c3_75 = arith.constant 3 : index
    %c0_76 = arith.constant 0 : index
    %c0_77 = arith.constant 0 : index
    %176 = vector.load %arg3[%c3_75, %c0_76, %c0_77] : memref<32x8x1xf32, #tpu.memory_space<vmem>>, vector<1x8x1xf32>
    %177 = vector.shape_cast %176 : vector<1x8x1xf32> to vector<8x1xf32>
    %178 = vector.extract_strided_slice %152 {offsets = [3, 0], sizes = [1, 256], strides = [1, 1]} : vector<32x256xf32> to vector<1x256xf32>
    %179 = vector.broadcast %177 : vector<8x1xf32> to vector<8x256xf32>
    %180 = vector.broadcast %178 : vector<1x256xf32> to vector<8x256xf32>
    %181 = arith.mulf %179, %180 : vector<8x256xf32>
    %182 = arith.addf %175, %181 : vector<8x256xf32>
    %c4_78 = arith.constant 4 : index
    %c0_79 = arith.constant 0 : index
    %c0_80 = arith.constant 0 : index
    %183 = vector.load %arg3[%c4_78, %c0_79, %c0_80] : memref<32x8x1xf32, #tpu.memory_space<vmem>>, vector<1x8x1xf32>
    %184 = vector.shape_cast %183 : vector<1x8x1xf32> to vector<8x1xf32>
    %185 = vector.extract_strided_slice %152 {offsets = [4, 0], sizes = [1, 256], strides = [1, 1]} : vector<32x256xf32> to vector<1x256xf32>
    %186 = vector.broadcast %184 : vector<8x1xf32> to vector<8x256xf32>
    %187 = vector.broadcast %185 : vector<1x256xf32> to vector<8x256xf32>
    %188 = arith.mulf %186, %187 : vector<8x256xf32>
    %189 = arith.addf %182, %188 : vector<8x256xf32>
    %c5_81 = arith.constant 5 : index
    %c0_82 = arith.constant 0 : index
    %c0_83 = arith.constant 0 : index
    %190 = vector.load %arg3[%c5_81, %c0_82, %c0_83] : memref<32x8x1xf32, #tpu.memory_space<vmem>>, vector<1x8x1xf32>
    %191 = vector.shape_cast %190 : vector<1x8x1xf32> to vector<8x1xf32>
    %192 = vector.extract_strided_slice %152 {offsets = [5, 0], sizes = [1, 256], strides = [1, 1]} : vector<32x256xf32> to vector<1x256xf32>
    %193 = vector.broadcast %191 : vector<8x1xf32> to vector<8x256xf32>
    %194 = vector.broadcast %192 : vector<1x256xf32> to vector<8x256xf32>
    %195 = arith.mulf %193, %194 : vector<8x256xf32>
    %196 = arith.addf %189, %195 : vector<8x256xf32>
    %c6_84 = arith.constant 6 : index
    %c0_85 = arith.constant 0 : index
    %c0_86 = arith.constant 0 : index
    %197 = vector.load %arg3[%c6_84, %c0_85, %c0_86] : memref<32x8x1xf32, #tpu.memory_space<vmem>>, vector<1x8x1xf32>
    %198 = vector.shape_cast %197 : vector<1x8x1xf32> to vector<8x1xf32>
    %199 = vector.extract_strided_slice %152 {offsets = [6, 0], sizes = [1, 256], strides = [1, 1]} : vector<32x256xf32> to vector<1x256xf32>
    %200 = vector.broadcast %198 : vector<8x1xf32> to vector<8x256xf32>
    %201 = vector.broadcast %199 : vector<1x256xf32> to vector<8x256xf32>
    %202 = arith.mulf %200, %201 : vector<8x256xf32>
    %203 = arith.addf %196, %202 : vector<8x256xf32>
    %c7_87 = arith.constant 7 : index
    %c0_88 = arith.constant 0 : index
    %c0_89 = arith.constant 0 : index
    %204 = vector.load %arg3[%c7_87, %c0_88, %c0_89] : memref<32x8x1xf32, #tpu.memory_space<vmem>>, vector<1x8x1xf32>
    %205 = vector.shape_cast %204 : vector<1x8x1xf32> to vector<8x1xf32>
    %206 = vector.extract_strided_slice %152 {offsets = [7, 0], sizes = [1, 256], strides = [1, 1]} : vector<32x256xf32> to vector<1x256xf32>
    %207 = vector.broadcast %205 : vector<8x1xf32> to vector<8x256xf32>
    %208 = vector.broadcast %206 : vector<1x256xf32> to vector<8x256xf32>
    %209 = arith.mulf %207, %208 : vector<8x256xf32>
    %210 = arith.addf %203, %209 : vector<8x256xf32>
    %c8 = arith.constant 8 : index
    %c0_90 = arith.constant 0 : index
    %c0_91 = arith.constant 0 : index
    %211 = vector.load %arg3[%c8, %c0_90, %c0_91] : memref<32x8x1xf32, #tpu.memory_space<vmem>>, vector<1x8x1xf32>
    %212 = vector.shape_cast %211 : vector<1x8x1xf32> to vector<8x1xf32>
    %213 = vector.extract_strided_slice %152 {offsets = [8, 0], sizes = [1, 256], strides = [1, 1]} : vector<32x256xf32> to vector<1x256xf32>
    %214 = vector.broadcast %212 : vector<8x1xf32> to vector<8x256xf32>
    %215 = vector.broadcast %213 : vector<1x256xf32> to vector<8x256xf32>
    %216 = arith.mulf %214, %215 : vector<8x256xf32>
    %217 = arith.addf %210, %216 : vector<8x256xf32>
    %c9 = arith.constant 9 : index
    %c0_92 = arith.constant 0 : index
    %c0_93 = arith.constant 0 : index
    %218 = vector.load %arg3[%c9, %c0_92, %c0_93] : memref<32x8x1xf32, #tpu.memory_space<vmem>>, vector<1x8x1xf32>
    %219 = vector.shape_cast %218 : vector<1x8x1xf32> to vector<8x1xf32>
    %220 = vector.extract_strided_slice %152 {offsets = [9, 0], sizes = [1, 256], strides = [1, 1]} : vector<32x256xf32> to vector<1x256xf32>
    %221 = vector.broadcast %219 : vector<8x1xf32> to vector<8x256xf32>
    %222 = vector.broadcast %220 : vector<1x256xf32> to vector<8x256xf32>
    %223 = arith.mulf %221, %222 : vector<8x256xf32>
    %224 = arith.addf %217, %223 : vector<8x256xf32>
    %c10 = arith.constant 10 : index
    %c0_94 = arith.constant 0 : index
    %c0_95 = arith.constant 0 : index
    %225 = vector.load %arg3[%c10, %c0_94, %c0_95] : memref<32x8x1xf32, #tpu.memory_space<vmem>>, vector<1x8x1xf32>
    %226 = vector.shape_cast %225 : vector<1x8x1xf32> to vector<8x1xf32>
    %227 = vector.extract_strided_slice %152 {offsets = [10, 0], sizes = [1, 256], strides = [1, 1]} : vector<32x256xf32> to vector<1x256xf32>
    %228 = vector.broadcast %226 : vector<8x1xf32> to vector<8x256xf32>
    %229 = vector.broadcast %227 : vector<1x256xf32> to vector<8x256xf32>
    %230 = arith.mulf %228, %229 : vector<8x256xf32>
    %231 = arith.addf %224, %230 : vector<8x256xf32>
    %c11 = arith.constant 11 : index
    %c0_96 = arith.constant 0 : index
    %c0_97 = arith.constant 0 : index
    %232 = vector.load %arg3[%c11, %c0_96, %c0_97] : memref<32x8x1xf32, #tpu.memory_space<vmem>>, vector<1x8x1xf32>
    %233 = vector.shape_cast %232 : vector<1x8x1xf32> to vector<8x1xf32>
    %234 = vector.extract_strided_slice %152 {offsets = [11, 0], sizes = [1, 256], strides = [1, 1]} : vector<32x256xf32> to vector<1x256xf32>
    %235 = vector.broadcast %233 : vector<8x1xf32> to vector<8x256xf32>
    %236 = vector.broadcast %234 : vector<1x256xf32> to vector<8x256xf32>
    %237 = arith.mulf %235, %236 : vector<8x256xf32>
    %238 = arith.addf %231, %237 : vector<8x256xf32>
    %c12 = arith.constant 12 : index
    %c0_98 = arith.constant 0 : index
    %c0_99 = arith.constant 0 : index
    %239 = vector.load %arg3[%c12, %c0_98, %c0_99] : memref<32x8x1xf32, #tpu.memory_space<vmem>>, vector<1x8x1xf32>
    %240 = vector.shape_cast %239 : vector<1x8x1xf32> to vector<8x1xf32>
    %241 = vector.extract_strided_slice %152 {offsets = [12, 0], sizes = [1, 256], strides = [1, 1]} : vector<32x256xf32> to vector<1x256xf32>
    %242 = vector.broadcast %240 : vector<8x1xf32> to vector<8x256xf32>
    %243 = vector.broadcast %241 : vector<1x256xf32> to vector<8x256xf32>
    %244 = arith.mulf %242, %243 : vector<8x256xf32>
    %245 = arith.addf %238, %244 : vector<8x256xf32>
    %c13 = arith.constant 13 : index
    %c0_100 = arith.constant 0 : index
    %c0_101 = arith.constant 0 : index
    %246 = vector.load %arg3[%c13, %c0_100, %c0_101] : memref<32x8x1xf32, #tpu.memory_space<vmem>>, vector<1x8x1xf32>
    %247 = vector.shape_cast %246 : vector<1x8x1xf32> to vector<8x1xf32>
    %248 = vector.extract_strided_slice %152 {offsets = [13, 0], sizes = [1, 256], strides = [1, 1]} : vector<32x256xf32> to vector<1x256xf32>
    %249 = vector.broadcast %247 : vector<8x1xf32> to vector<8x256xf32>
    %250 = vector.broadcast %248 : vector<1x256xf32> to vector<8x256xf32>
    %251 = arith.mulf %249, %250 : vector<8x256xf32>
    %252 = arith.addf %245, %251 : vector<8x256xf32>
    %c14 = arith.constant 14 : index
    %c0_102 = arith.constant 0 : index
    %c0_103 = arith.constant 0 : index
    %253 = vector.load %arg3[%c14, %c0_102, %c0_103] : memref<32x8x1xf32, #tpu.memory_space<vmem>>, vector<1x8x1xf32>
    %254 = vector.shape_cast %253 : vector<1x8x1xf32> to vector<8x1xf32>
    %255 = vector.extract_strided_slice %152 {offsets = [14, 0], sizes = [1, 256], strides = [1, 1]} : vector<32x256xf32> to vector<1x256xf32>
    %256 = vector.broadcast %254 : vector<8x1xf32> to vector<8x256xf32>
    %257 = vector.broadcast %255 : vector<1x256xf32> to vector<8x256xf32>
    %258 = arith.mulf %256, %257 : vector<8x256xf32>
    %259 = arith.addf %252, %258 : vector<8x256xf32>
    %c15 = arith.constant 15 : index
    %c0_104 = arith.constant 0 : index
    %c0_105 = arith.constant 0 : index
    %260 = vector.load %arg3[%c15, %c0_104, %c0_105] : memref<32x8x1xf32, #tpu.memory_space<vmem>>, vector<1x8x1xf32>
    %261 = vector.shape_cast %260 : vector<1x8x1xf32> to vector<8x1xf32>
    %262 = vector.extract_strided_slice %152 {offsets = [15, 0], sizes = [1, 256], strides = [1, 1]} : vector<32x256xf32> to vector<1x256xf32>
    %263 = vector.broadcast %261 : vector<8x1xf32> to vector<8x256xf32>
    %264 = vector.broadcast %262 : vector<1x256xf32> to vector<8x256xf32>
    %265 = arith.mulf %263, %264 : vector<8x256xf32>
    %266 = arith.addf %259, %265 : vector<8x256xf32>
    %c16 = arith.constant 16 : index
    %c0_106 = arith.constant 0 : index
    %c0_107 = arith.constant 0 : index
    %267 = vector.load %arg3[%c16, %c0_106, %c0_107] : memref<32x8x1xf32, #tpu.memory_space<vmem>>, vector<1x8x1xf32>
    %268 = vector.shape_cast %267 : vector<1x8x1xf32> to vector<8x1xf32>
    %269 = vector.extract_strided_slice %152 {offsets = [16, 0], sizes = [1, 256], strides = [1, 1]} : vector<32x256xf32> to vector<1x256xf32>
    %270 = vector.broadcast %268 : vector<8x1xf32> to vector<8x256xf32>
    %271 = vector.broadcast %269 : vector<1x256xf32> to vector<8x256xf32>
    %272 = arith.mulf %270, %271 : vector<8x256xf32>
    %273 = arith.addf %266, %272 : vector<8x256xf32>
    %c17 = arith.constant 17 : index
    %c0_108 = arith.constant 0 : index
    %c0_109 = arith.constant 0 : index
    %274 = vector.load %arg3[%c17, %c0_108, %c0_109] : memref<32x8x1xf32, #tpu.memory_space<vmem>>, vector<1x8x1xf32>
    %275 = vector.shape_cast %274 : vector<1x8x1xf32> to vector<8x1xf32>
    %276 = vector.extract_strided_slice %152 {offsets = [17, 0], sizes = [1, 256], strides = [1, 1]} : vector<32x256xf32> to vector<1x256xf32>
    %277 = vector.broadcast %275 : vector<8x1xf32> to vector<8x256xf32>
    %278 = vector.broadcast %276 : vector<1x256xf32> to vector<8x256xf32>
    %279 = arith.mulf %277, %278 : vector<8x256xf32>
    %280 = arith.addf %273, %279 : vector<8x256xf32>
    %c18 = arith.constant 18 : index
    %c0_110 = arith.constant 0 : index
    %c0_111 = arith.constant 0 : index
    %281 = vector.load %arg3[%c18, %c0_110, %c0_111] : memref<32x8x1xf32, #tpu.memory_space<vmem>>, vector<1x8x1xf32>
    %282 = vector.shape_cast %281 : vector<1x8x1xf32> to vector<8x1xf32>
    %283 = vector.extract_strided_slice %152 {offsets = [18, 0], sizes = [1, 256], strides = [1, 1]} : vector<32x256xf32> to vector<1x256xf32>
    %284 = vector.broadcast %282 : vector<8x1xf32> to vector<8x256xf32>
    %285 = vector.broadcast %283 : vector<1x256xf32> to vector<8x256xf32>
    %286 = arith.mulf %284, %285 : vector<8x256xf32>
    %287 = arith.addf %280, %286 : vector<8x256xf32>
    %c19 = arith.constant 19 : index
    %c0_112 = arith.constant 0 : index
    %c0_113 = arith.constant 0 : index
    %288 = vector.load %arg3[%c19, %c0_112, %c0_113] : memref<32x8x1xf32, #tpu.memory_space<vmem>>, vector<1x8x1xf32>
    %289 = vector.shape_cast %288 : vector<1x8x1xf32> to vector<8x1xf32>
    %290 = vector.extract_strided_slice %152 {offsets = [19, 0], sizes = [1, 256], strides = [1, 1]} : vector<32x256xf32> to vector<1x256xf32>
    %291 = vector.broadcast %289 : vector<8x1xf32> to vector<8x256xf32>
    %292 = vector.broadcast %290 : vector<1x256xf32> to vector<8x256xf32>
    %293 = arith.mulf %291, %292 : vector<8x256xf32>
    %294 = arith.addf %287, %293 : vector<8x256xf32>
    %c20 = arith.constant 20 : index
    %c0_114 = arith.constant 0 : index
    %c0_115 = arith.constant 0 : index
    %295 = vector.load %arg3[%c20, %c0_114, %c0_115] : memref<32x8x1xf32, #tpu.memory_space<vmem>>, vector<1x8x1xf32>
    %296 = vector.shape_cast %295 : vector<1x8x1xf32> to vector<8x1xf32>
    %297 = vector.extract_strided_slice %152 {offsets = [20, 0], sizes = [1, 256], strides = [1, 1]} : vector<32x256xf32> to vector<1x256xf32>
    %298 = vector.broadcast %296 : vector<8x1xf32> to vector<8x256xf32>
    %299 = vector.broadcast %297 : vector<1x256xf32> to vector<8x256xf32>
    %300 = arith.mulf %298, %299 : vector<8x256xf32>
    %301 = arith.addf %294, %300 : vector<8x256xf32>
    %c21 = arith.constant 21 : index
    %c0_116 = arith.constant 0 : index
    %c0_117 = arith.constant 0 : index
    %302 = vector.load %arg3[%c21, %c0_116, %c0_117] : memref<32x8x1xf32, #tpu.memory_space<vmem>>, vector<1x8x1xf32>
    %303 = vector.shape_cast %302 : vector<1x8x1xf32> to vector<8x1xf32>
    %304 = vector.extract_strided_slice %152 {offsets = [21, 0], sizes = [1, 256], strides = [1, 1]} : vector<32x256xf32> to vector<1x256xf32>
    %305 = vector.broadcast %303 : vector<8x1xf32> to vector<8x256xf32>
    %306 = vector.broadcast %304 : vector<1x256xf32> to vector<8x256xf32>
    %307 = arith.mulf %305, %306 : vector<8x256xf32>
    %308 = arith.addf %301, %307 : vector<8x256xf32>
    %c22 = arith.constant 22 : index
    %c0_118 = arith.constant 0 : index
    %c0_119 = arith.constant 0 : index
    %309 = vector.load %arg3[%c22, %c0_118, %c0_119] : memref<32x8x1xf32, #tpu.memory_space<vmem>>, vector<1x8x1xf32>
    %310 = vector.shape_cast %309 : vector<1x8x1xf32> to vector<8x1xf32>
    %311 = vector.extract_strided_slice %152 {offsets = [22, 0], sizes = [1, 256], strides = [1, 1]} : vector<32x256xf32> to vector<1x256xf32>
    %312 = vector.broadcast %310 : vector<8x1xf32> to vector<8x256xf32>
    %313 = vector.broadcast %311 : vector<1x256xf32> to vector<8x256xf32>
    %314 = arith.mulf %312, %313 : vector<8x256xf32>
    %315 = arith.addf %308, %314 : vector<8x256xf32>
    %c23 = arith.constant 23 : index
    %c0_120 = arith.constant 0 : index
    %c0_121 = arith.constant 0 : index
    %316 = vector.load %arg3[%c23, %c0_120, %c0_121] : memref<32x8x1xf32, #tpu.memory_space<vmem>>, vector<1x8x1xf32>
    %317 = vector.shape_cast %316 : vector<1x8x1xf32> to vector<8x1xf32>
    %318 = vector.extract_strided_slice %152 {offsets = [23, 0], sizes = [1, 256], strides = [1, 1]} : vector<32x256xf32> to vector<1x256xf32>
    %319 = vector.broadcast %317 : vector<8x1xf32> to vector<8x256xf32>
    %320 = vector.broadcast %318 : vector<1x256xf32> to vector<8x256xf32>
    %321 = arith.mulf %319, %320 : vector<8x256xf32>
    %322 = arith.addf %315, %321 : vector<8x256xf32>
    %c24 = arith.constant 24 : index
    %c0_122 = arith.constant 0 : index
    %c0_123 = arith.constant 0 : index
    %323 = vector.load %arg3[%c24, %c0_122, %c0_123] : memref<32x8x1xf32, #tpu.memory_space<vmem>>, vector<1x8x1xf32>
    %324 = vector.shape_cast %323 : vector<1x8x1xf32> to vector<8x1xf32>
    %325 = vector.extract_strided_slice %152 {offsets = [24, 0], sizes = [1, 256], strides = [1, 1]} : vector<32x256xf32> to vector<1x256xf32>
    %326 = vector.broadcast %324 : vector<8x1xf32> to vector<8x256xf32>
    %327 = vector.broadcast %325 : vector<1x256xf32> to vector<8x256xf32>
    %328 = arith.mulf %326, %327 : vector<8x256xf32>
    %329 = arith.addf %322, %328 : vector<8x256xf32>
    %c25 = arith.constant 25 : index
    %c0_124 = arith.constant 0 : index
    %c0_125 = arith.constant 0 : index
    %330 = vector.load %arg3[%c25, %c0_124, %c0_125] : memref<32x8x1xf32, #tpu.memory_space<vmem>>, vector<1x8x1xf32>
    %331 = vector.shape_cast %330 : vector<1x8x1xf32> to vector<8x1xf32>
    %332 = vector.extract_strided_slice %152 {offsets = [25, 0], sizes = [1, 256], strides = [1, 1]} : vector<32x256xf32> to vector<1x256xf32>
    %333 = vector.broadcast %331 : vector<8x1xf32> to vector<8x256xf32>
    %334 = vector.broadcast %332 : vector<1x256xf32> to vector<8x256xf32>
    %335 = arith.mulf %333, %334 : vector<8x256xf32>
    %336 = arith.addf %329, %335 : vector<8x256xf32>
    %c26 = arith.constant 26 : index
    %c0_126 = arith.constant 0 : index
    %c0_127 = arith.constant 0 : index
    %337 = vector.load %arg3[%c26, %c0_126, %c0_127] : memref<32x8x1xf32, #tpu.memory_space<vmem>>, vector<1x8x1xf32>
    %338 = vector.shape_cast %337 : vector<1x8x1xf32> to vector<8x1xf32>
    %339 = vector.extract_strided_slice %152 {offsets = [26, 0], sizes = [1, 256], strides = [1, 1]} : vector<32x256xf32> to vector<1x256xf32>
    %340 = vector.broadcast %338 : vector<8x1xf32> to vector<8x256xf32>
    %341 = vector.broadcast %339 : vector<1x256xf32> to vector<8x256xf32>
    %342 = arith.mulf %340, %341 : vector<8x256xf32>
    %343 = arith.addf %336, %342 : vector<8x256xf32>
    %c27 = arith.constant 27 : index
    %c0_128 = arith.constant 0 : index
    %c0_129 = arith.constant 0 : index
    %344 = vector.load %arg3[%c27, %c0_128, %c0_129] : memref<32x8x1xf32, #tpu.memory_space<vmem>>, vector<1x8x1xf32>
    %345 = vector.shape_cast %344 : vector<1x8x1xf32> to vector<8x1xf32>
    %346 = vector.extract_strided_slice %152 {offsets = [27, 0], sizes = [1, 256], strides = [1, 1]} : vector<32x256xf32> to vector<1x256xf32>
    %347 = vector.broadcast %345 : vector<8x1xf32> to vector<8x256xf32>
    %348 = vector.broadcast %346 : vector<1x256xf32> to vector<8x256xf32>
    %349 = arith.mulf %347, %348 : vector<8x256xf32>
    %350 = arith.addf %343, %349 : vector<8x256xf32>
    %c28 = arith.constant 28 : index
    %c0_130 = arith.constant 0 : index
    %c0_131 = arith.constant 0 : index
    %351 = vector.load %arg3[%c28, %c0_130, %c0_131] : memref<32x8x1xf32, #tpu.memory_space<vmem>>, vector<1x8x1xf32>
    %352 = vector.shape_cast %351 : vector<1x8x1xf32> to vector<8x1xf32>
    %353 = vector.extract_strided_slice %152 {offsets = [28, 0], sizes = [1, 256], strides = [1, 1]} : vector<32x256xf32> to vector<1x256xf32>
    %354 = vector.broadcast %352 : vector<8x1xf32> to vector<8x256xf32>
    %355 = vector.broadcast %353 : vector<1x256xf32> to vector<8x256xf32>
    %356 = arith.mulf %354, %355 : vector<8x256xf32>
    %357 = arith.addf %350, %356 : vector<8x256xf32>
    %c29 = arith.constant 29 : index
    %c0_132 = arith.constant 0 : index
    %c0_133 = arith.constant 0 : index
    %358 = vector.load %arg3[%c29, %c0_132, %c0_133] : memref<32x8x1xf32, #tpu.memory_space<vmem>>, vector<1x8x1xf32>
    %359 = vector.shape_cast %358 : vector<1x8x1xf32> to vector<8x1xf32>
    %360 = vector.extract_strided_slice %152 {offsets = [29, 0], sizes = [1, 256], strides = [1, 1]} : vector<32x256xf32> to vector<1x256xf32>
    %361 = vector.broadcast %359 : vector<8x1xf32> to vector<8x256xf32>
    %362 = vector.broadcast %360 : vector<1x256xf32> to vector<8x256xf32>
    %363 = arith.mulf %361, %362 : vector<8x256xf32>
    %364 = arith.addf %357, %363 : vector<8x256xf32>
    %c30 = arith.constant 30 : index
    %c0_134 = arith.constant 0 : index
    %c0_135 = arith.constant 0 : index
    %365 = vector.load %arg3[%c30, %c0_134, %c0_135] : memref<32x8x1xf32, #tpu.memory_space<vmem>>, vector<1x8x1xf32>
    %366 = vector.shape_cast %365 : vector<1x8x1xf32> to vector<8x1xf32>
    %367 = vector.extract_strided_slice %152 {offsets = [30, 0], sizes = [1, 256], strides = [1, 1]} : vector<32x256xf32> to vector<1x256xf32>
    %368 = vector.broadcast %366 : vector<8x1xf32> to vector<8x256xf32>
    %369 = vector.broadcast %367 : vector<1x256xf32> to vector<8x256xf32>
    %370 = arith.mulf %368, %369 : vector<8x256xf32>
    %371 = arith.addf %364, %370 : vector<8x256xf32>
    %c31 = arith.constant 31 : index
    %c0_136 = arith.constant 0 : index
    %c0_137 = arith.constant 0 : index
    %372 = vector.load %arg3[%c31, %c0_136, %c0_137] : memref<32x8x1xf32, #tpu.memory_space<vmem>>, vector<1x8x1xf32>
    %373 = vector.shape_cast %372 : vector<1x8x1xf32> to vector<8x1xf32>
    %374 = vector.extract_strided_slice %152 {offsets = [31, 0], sizes = [1, 256], strides = [1, 1]} : vector<32x256xf32> to vector<1x256xf32>
    %375 = vector.broadcast %373 : vector<8x1xf32> to vector<8x256xf32>
    %376 = vector.broadcast %374 : vector<1x256xf32> to vector<8x256xf32>
    %377 = arith.mulf %375, %376 : vector<8x256xf32>
    %378 = arith.addf %371, %377 : vector<8x256xf32>
    %cst_138 = arith.constant 0.000000e+00 : f32
    %cst_139 = arith.constant 6.000000e+00 : f32
    %379 = vector.broadcast %cst_138 : f32 to vector<8x256xf32>
    %380 = arith.maximumf %379, %378 : vector<8x256xf32>
    %381 = vector.broadcast %cst_139 : f32 to vector<8x256xf32>
    %382 = arith.minimumf %381, %380 : vector<8x256xf32>
    %383 = arith.addf %382, %1 : vector<8x256xf32>
    %c0_140 = arith.constant 0 : index
    %c0_141 = arith.constant 0 : index
    %c0_142 = arith.constant 0 : index
    %384 = vector.load %arg6[%c0_140, %c0_141, %c0_142] : memref<1x8x256xf32, #tpu.memory_space<vmem>>, vector<1x8x256xf32>
    %385 = vector.shape_cast %384 : vector<1x8x256xf32> to vector<8x256xf32>
    %386 = vector.shape_cast %383 : vector<8x256xf32> to vector<1x8x256xf32>
    tpu.vector_store %arg6[%c0_140, %c0_141, %c0_142], %386 {strides = array<i32>} : memref<1x8x256xf32, #tpu.memory_space<vmem>>, vector<1x8x256xf32>,
    return
  }
  func.func @transform_0(%arg0: i32) -> (i32, i32, i32) {
    %c0_i32 = arith.constant 0 : i32
    %c0_i32_0 = arith.constant 0 : i32
    %c0_i32_1 = arith.constant 0 : i32
    return %arg0, %c0_i32, %c0_i32_0 : i32, i32, i32
  }
  func.func @transform_1(%arg0: i32) -> (i32, i32, i32) {
    %c0_i32 = arith.constant 0 : i32
    %c0_i32_0 = arith.constant 0 : i32
    %c0_i32_1 = arith.constant 0 : i32
    %c0_i32_2 = arith.constant 0 : i32
    return %c0_i32, %c0_i32_0, %c0_i32_1 : i32, i32, i32
  }
  func.func @transform_2(%arg0: i32) -> (i32, i32, i32) {
    %c0_i32 = arith.constant 0 : i32
    %c0_i32_0 = arith.constant 0 : i32
    %c0_i32_1 = arith.constant 0 : i32
    %c0_i32_2 = arith.constant 0 : i32
    return %c0_i32, %c0_i32_0, %c0_i32_1 : i32, i32, i32
  }
  func.func @transform_3(%arg0: i32) -> (i32, i32, i32, i32) {
    %c0_i32 = arith.constant 0 : i32
    %c0_i32_0 = arith.constant 0 : i32
    %c0_i32_1 = arith.constant 0 : i32
    %c0_i32_2 = arith.constant 0 : i32
    %c0_i32_3 = arith.constant 0 : i32
    return %c0_i32, %c0_i32_0, %c0_i32_1, %c0_i32_2 : i32, i32, i32, i32
  }
  func.func @transform_4(%arg0: i32) -> (i32, i32) {
    %c0_i32 = arith.constant 0 : i32
    %c0_i32_0 = arith.constant 0 : i32
    %c0_i32_1 = arith.constant 0 : i32
    return %c0_i32, %c0_i32_0 : i32, i32
  }
  func.func @transform_5(%arg0: i32) -> (i32, i32, i32) {
    %c0_i32 = arith.constant 0 : i32
    %c0_i32_0 = arith.constant 0 : i32
    %c0_i32_1 = arith.constant 0 : i32
    return %arg0, %c0_i32, %c0_i32_0 : i32, i32, i32
  }
}

</mosaic_0001>

<bundles_post_ra>
// kernel: tile.28
= control target key start
LH: loop header
LB: loop body
LE: loop exit
PB: predicated region body
PF: predicated region fallthrough
CT: control target
= control target key end

     0   :  { %s22_s0 = inlined_call_operand.vmem [shape: f32[16], index: 0, kind: input, shape index: {}]   ;;  %s23_s1 = inlined_call_operand.vmem [shape: f32[2,16], index: 1, kind: output, shape index: {}]  }
   0x1   :  { %v4_v0 = vld [vmem:[%s22_s0] ss:$0 sm:$0xff] }
   0x2   :  { %5 = vst [vmem:[%s23_s1] sm:$0x3] %v4_v0 }

// kernel: tile.29
= control target key start
LH: loop header
LB: loop body
LE: loop exit
PB: predicated region body
PF: predicated region fallthrough
CT: control target
= control target key end

     0   :  { %vm7_vm0 = vcmask 130048   ;;  %vm13_vm1 = vcmask 261248   ;;  %s39_s0 = inlined_call_operand.vmem [shape: f32[2,16], index: 0, kind: input, shape index: {}]   ;;  %s40_s1 = inlined_call_operand.vmem [shape: f32[32], index: 1, kind: output, shape index: {}]  }
   0x1   :  { %v4_v0 = vld [vmem:[%s39_s0] sm:$0x3]  ;;  %s22_s0 = smov 16  }
   0x2   :  { %5 = vst [vmem:[#allocation1] sm:$0x3] %v4_v0 }
   0x9   :  { %v10_v1 = vld [vmem:[#allocation1 + $0x1] sm:$0x1]   ;;  %v6_v2 = vld [vmem:[#allocation1] sm:$0x1]  }
   0xa   :  { %11 = vrot.lane.b32.xlu0 %v10_v1, %s22_s0  ;;  %8 = vst.msk [vmem:[#allocation0] sm:$0x1] %vm7_vm0, %v6_v2  }
  0x7c   :  { %v12_v3 = vpop.permute.xlu0 %11  }
  0x7d   :  { %14 = vst.msk [vmem:[#allocation0] sm:$0x1] %vm13_vm1, %v12_v3  }
  0x84   :  { %v18_v4 = vld [vmem:[#allocation0] sm:$0x1] }
  0x85   :  { %20 = vst [vmem:[%s40_s1] sm:$0x1] %v18_v4 }

// kernel: tile.39
= control target key start
LH: loop header
LB: loop body
LE: loop exit
PB: predicated region body
PF: predicated region fallthrough
CT: control target
= control target key end

     0   :  { %vm7_vm0 = vcmask 31744   ;;  %vm13_vm1 = vcmask 64544   ;;  %s39_s0 = inlined_call_operand.vmem [shape: f32[2,4], index: 0, kind: input, shape index: {}]   ;;  %s40_s1 = inlined_call_operand.vmem [shape: f32[8], index: 1, kind: output, shape index: {}]  }
   0x1   :  { %v4_v0 = vld [vmem:[%s39_s0] sm:$0x3]  ;;  %s22_s0 = smov 4  }
   0x2   :  { %5 = vst [vmem:[#allocation1] sm:$0x3] %v4_v0 }
   0x9   :  { %v10_v1 = vld [vmem:[#allocation1 + $0x1] sm:$0x1]   ;;  %v6_v2 = vld [vmem:[#allocation1] sm:$0x1]  }
   0xa   :  { %11 = vrot.lane.b32.xlu0 %v10_v1, %s22_s0  ;;  %8 = vst.msk [vmem:[#allocation0] sm:$0x1] %vm7_vm0, %v6_v2  }
  0x7c   :  { %v12_v3 = vpop.permute.xlu0 %11  }
  0x7d   :  { %14 = vst.msk [vmem:[#allocation0] sm:$0x1] %vm13_vm1, %v12_v3  }
  0x84   :  { %v18_v4 = vld [vmem:[#allocation0] sm:$0x1] }
  0x85   :  { %20 = vst [vmem:[%s40_s1] sm:$0x1] %v18_v4 }

// kernel: tile.38
= control target key start
LH: loop header
LB: loop body
LE: loop exit
PB: predicated region body
PF: predicated region fallthrough
CT: control target
= control target key end

     0   :  { %s22_s0 = inlined_call_operand.vmem [shape: f32[4], index: 0, kind: input, shape index: {}]   ;;  %s23_s1 = inlined_call_operand.vmem [shape: f32[2,4], index: 1, kind: output, shape index: {}]  }
   0x1   :  { %v4_v0 = vld [vmem:[%s22_s0] ss:$0 sm:$0xff] }
   0x2   :  { %5 = vst [vmem:[%s23_s1] sm:$0x3] %v4_v0 }

// kernel: inverted_residual_v1.1
= control target key start
LH: loop header
LB: loop body
LE: loop exit
PB: predicated region body
PF: predicated region fallthrough
CT: control target
= control target key end

     0   :  { %v1821_v0 = vmov 0   ;;  %s1822_s19 = smov 1   ;;  %s1823_s20 = smov 127   ;;  %vm501_vm0 = vcmask 7168   ;;  %vm546_vm4 = vcmask 1039360   ;;  %vm983_vm6 = vcmask 130048   ;;  %s3052_s4 = inlined_call_operand.vmem [shape: f32[72,1], index: 4, kind: input, shape index: {}]   ;;  %s3053_s1 = inlined_call_operand.vmem [shape: f32[8,32,1], index: 1, kind: input, shape index: {}]   ;;  %s3054_s3 = inlined_call_operand.vmem [shape: f32[3,3,32,1], index: 3, kind: input, shape index: {}]   ;;  %s3055_s0 = inlined_call_operand.vmem [shape: f32[1,8,256], index: 0, kind: input, shape index: {}]   ;;  %s3056_s2 = inlined_call_operand.vmem [shape: f32[32,8,1], index: 2, kind: input, shape index: {}]   ;;  %s3057_s5 = inlined_call_operand.vmem [shape: f32[1,8,256], index: 5, kind: output, shape index: {}]  }
   0x1   :  { %1818 = vset.pattern.permute.xlu1 %v1821_v0  ;;  %1817 = vset.pattern.permute.xlu0 %v1821_v0  ;;  %v24_v1 = vld [vmem:[%s3052_s4 + $0x10] sm:$0xff]  ;;  %v22_v2 = vld [vmem:[%s3052_s4] sm:$0xff]  ;;  %v25_v3 = vld [vmem:[%s3052_s4 + $0x18] sm:$0xff]  ;;  %s1824_s11 = smov 16   ;;  %s1825_s12 = smov 112   ;;  %vm1048_vm9 = vcmask 916480  }
   0x2   :  { %43 = vperm.xlu1 %1818, %v24_v1   ;;  %33 = vperm.xlu0 %1817, %v22_v2   ;;  %v23_v4 = vld [vmem:[%s3052_s4 + $0x8] sm:$0xff]  ;;  %v51_v6 = vld [vmem:[%s3053_s1] sm:$0xff]  ;;  %v54_v7 = vld [vmem:[%s3053_s1 + $0x18] sm:$0xff] }
   0x3   :  { %v52_v5 = vld [vmem:[%s3053_s1 + $0x8] sm:$0xff]  ;;  %v53_v8 = vld [vmem:[%s3053_s1 + $0x10] sm:$0xff]  ;;  %v1721_v10 = vld [vmem:[%s3053_s1 + $0x20] sm:$0xff] }
   0x4   :  { %v1722_v9 = vld [vmem:[%s3053_s1 + $0x28] sm:$0xff]  ;;  %v1724_v11 = vld [vmem:[%s3053_s1 + $0x38] sm:$0xff]  ;;  %v1723_v12 = vld [vmem:[%s3053_s1 + $0x30] sm:$0xff] }
   0x5   :  { %v1726_v13 = vld [vmem:[%s3053_s1 + $0x48] sm:$0xff]  ;;  %v1725_v14 = vld [vmem:[%s3053_s1 + $0x40] sm:$0xff]  ;;  %v1728_v15 = vld [vmem:[%s3053_s1 + $0x58] sm:$0xff] }
   0x6   :  { %48 = vperm.xlu1 %1818, %v25_v3   ;;  %38 = vperm.xlu0 %1817, %v23_v4   ;;  %v1727_v16 = vld [vmem:[%s3053_s1 + $0x50] sm:$0xff]  ;;  %v1730_v17 = vld [vmem:[%s3053_s1 + $0x68] sm:$0xff]  ;;  %v1729_v18 = vld [vmem:[%s3053_s1 + $0x60] sm:$0xff] }
   0x7   :  { %v1732_v19 = vld [vmem:[%s3053_s1 + $0x78] sm:$0xff]  ;;  %v1731_v20 = vld [vmem:[%s3053_s1 + $0x70] sm:$0xff]  ;;  %v1734_v21 = vld [vmem:[%s3053_s1 + $0x88] sm:$0xff] }
   0x8   :  { %v1733_v22 = vld [vmem:[%s3053_s1 + $0x80] sm:$0xff]  ;;  %v1736_v23 = vld [vmem:[%s3053_s1 + $0x98] sm:$0xff]  ;;  %v1735_v24 = vld [vmem:[%s3053_s1 + $0x90] sm:$0xff] }
   0x9   :  { %v1738_v25 = vld [vmem:[%s3053_s1 + $0xa8] sm:$0xff]  ;;  %v1737_v26 = vld [vmem:[%s3053_s1 + $0xa0] sm:$0xff]  ;;  %v1740_v27 = vld [vmem:[%s3053_s1 + $0xb8] sm:$0xff] }
   0xa   :  { %62 = vperm.xlu1 %1818, %v52_v5   ;;  %57 = vperm.xlu0 %1817, %v51_v6   ;;  %v1739_v28 = vld [vmem:[%s3053_s1 + $0xb0] sm:$0xff]  ;;  %v1742_v29 = vld [vmem:[%s3053_s1 + $0xc8] sm:$0xff]  ;;  %v1741_v30 = vld [vmem:[%s3053_s1 + $0xc0] sm:$0xff] }
   0xb   :  { %v1744_v31 = vld [vmem:[%s3053_s1 + $0xd8] sm:$0xff]  ;;  %v1743_v32 = vld [vmem:[%s3053_s1 + $0xd0] sm:$0xff]  ;;  %v1746_v33 = vld [vmem:[%s3053_s1 + $0xe8] sm:$0xff] }
   0xc   :  { %v1745_v34 = vld [vmem:[%s3053_s1 + $0xe0] sm:$0xff]  ;;  %v1748_v35 = vld [vmem:[%s3053_s1 + $0xf8] sm:$0xff]  ;;  %v1747_v36 = vld [vmem:[%s3053_s1 + $0xf0] sm:$0xff] }
   0xd   :  { %v572_v37 = vld [vmem:[%s3054_s3 + $0x8] sm:$0xff]  ;;  %v571_v38 = vld [vmem:[%s3054_s3] sm:$0xff]  ;;  %v574_v39 = vld [vmem:[%s3054_s3 + $0x18] sm:$0xff] }
   0xe   :  { %72 = vperm.xlu1 %1818, %v54_v7   ;;  %67 = vperm.xlu0 %1817, %v53_v8   ;;  %v573_v40 = vld [vmem:[%s3054_s3 + $0x10] sm:$0xff]  ;;  %v1750_v41 = vld [vmem:[%s3054_s3 + $0x28] sm:$0xff]  ;;  %v1749_v42 = vld [vmem:[%s3054_s3 + $0x20] sm:$0xff] }
   0xf   :  { %v1752_v43 = vld [vmem:[%s3054_s3 + $0x38] sm:$0xff]  ;;  %v1751_v44 = vld [vmem:[%s3054_s3 + $0x30] sm:$0xff]  ;;  %v1754_v45 = vld [vmem:[%s3054_s3 + $0x48] sm:$0xff] }
  0x10   :  { %v1753_v46 = vld [vmem:[%s3054_s3 + $0x40] sm:$0xff]  ;;  %v1756_v47 = vld [vmem:[%s3054_s3 + $0x58] sm:$0xff]  ;;  %v1755_v48 = vld [vmem:[%s3054_s3 + $0x50] sm:$0xff] }
  0x11   :  { %v1758_v49 = vld [vmem:[%s3054_s3 + $0x68] sm:$0xff]  ;;  %v1757_v50 = vld [vmem:[%s3054_s3 + $0x60] sm:$0xff]  ;;  %v1760_v51 = vld [vmem:[%s3054_s3 + $0x78] sm:$0xff] }
  0x12   :  { %111 = vperm.xlu1 %1818, %v1722_v9   ;;  %106 = vperm.xlu0 %1817, %v1721_v10   ;;  %v1759_v52 = vld [vmem:[%s3054_s3 + $0x70] sm:$0xff]  ;;  %v27_v53 = vld [vmem:[%s3052_s4 + $0x28] sm:$0xff]  ;;  %v26_v54 = vld [vmem:[%s3052_s4 + $0x20] sm:$0xff] }
  0x13   :  { %v29_v55 = vld [vmem:[%s3052_s4 + $0x38] sm:$0xff]  ;;  %v28_v56 = vld [vmem:[%s3052_s4 + $0x30] sm:$0xff]  ;;  %v1762_v57 = vld [vmem:[%s3054_s3 + $0x88] sm:$0xff] }
  0x14   :  { %v1761_v58 = vld [vmem:[%s3054_s3 + $0x80] sm:$0xff]  ;;  %v1764_v59 = vld [vmem:[%s3054_s3 + $0x98] sm:$0xff]  ;;  %v1763_v60 = vld [vmem:[%s3054_s3 + $0x90] sm:$0xff] }
  0x15   :  { %v1766_v61 = vld [vmem:[%s3054_s3 + $0xa8] sm:$0xff]  ;;  %v1765_v62 = vld [vmem:[%s3054_s3 + $0xa0] sm:$0xff] }
  0x16   :  { %121 = vperm.xlu1 %1818, %v1724_v11   ;;  %116 = vperm.xlu0 %1817, %v1723_v12   ;;  %v3058_v11 = vlaneseq }
  0x1a   :  { %160 = vperm.xlu1 %1818, %v1726_v13   ;;  %155 = vperm.xlu0 %1817, %v1725_v14   ;;  %v76_v14 = vshrl.u32 %v3058_v11, 7 }
  0x1e   :  { %170 = vperm.xlu1 %1818, %v1728_v15   ;;  %165 = vperm.xlu0 %1817, %v1727_v16  }
  0x22   :  { %209 = vperm.xlu1 %1818, %v1730_v17   ;;  %204 = vperm.xlu0 %1817, %v1729_v18   ;;  %v2059_v17 = vsub.s32 0, %v76_v14  ;;  %v20_v18 = vld [vmem:[%s3055_s0] sm:$0xff] }
  0x26   :  { %219 = vperm.xlu1 %1818, %v1732_v19   ;;  %214 = vperm.xlu0 %1817, %v1731_v20   ;;  %v21_v19 = vld [vmem:[%s3055_s0 + $0x8] sm:$0xff]  ;;  %v2067_v20 = vsub.s32 1, %v76_v14 }
  0x28   :  { %3073 = vst [vmem:[#allocation2_spill] sm:$0xff] %v2067_v20 }
  0x2a   :  { %258 = vperm.xlu1 %1818, %v1734_v21   ;;  %253 = vperm.xlu0 %1817, %v1733_v22  }
  0x2e   :  { %268 = vperm.xlu1 %1818, %v1736_v23   ;;  %263 = vperm.xlu0 %1817, %v1735_v24   ;;  %v2073_v23 = vsub.s32 2, %v76_v14  ;;  %v78_v24 = vrot.slane %v20_v18, %v2059_v17 }
  0x30   :  { %3074 = vst [vmem:[#allocation3_spill] sm:$0xff] %v2073_v23 }
  0x32   :  { %307 = vperm.xlu1 %1818, %v1738_v25   ;;  %302 = vperm.xlu0 %1817, %v1737_v26   ;;  %v2076_v25 = vsub.s32 3, %v76_v14  ;;  %v2078_v26 = vsub.s32 4, %v76_v14 }
  0x34   :  { %3075 = vst [vmem:[#allocation4_spill] sm:$0xff] %v2076_v25  ;;  %3076 = vst [vmem:[#allocation5_spill] sm:$0xff] %v2078_v26 }
  0x36   :  { %317 = vperm.xlu1 %1818, %v1740_v27   ;;  %312 = vperm.xlu0 %1817, %v1739_v28   ;;  %v82_v27 = vrot.slane %v21_v19, %v2059_v17  ;;  %v2081_v28 = vsub.s32 5, %v76_v14 }
  0x38   :  { %3077 = vst [vmem:[#allocation6_spill] sm:$0xff] %v2081_v28 }
  0x3a   :  { %356 = vperm.xlu1 %1818, %v1742_v29   ;;  %351 = vperm.xlu0 %1817, %v1741_v30   ;;  %v127_v29 = vrot.slane %v20_v18, %v2067_v20 }
  0x3e   :  { %366 = vperm.xlu1 %1818, %v1744_v31   ;;  %361 = vperm.xlu0 %1817, %v1743_v32   ;;  %v2088_v32 = vsub.s32 6, %v76_v14 }
  0x40   :  { %3078 = vst [vmem:[#allocation7_spill] sm:$0xff] %v2088_v32 }
  0x42   :  { %405 = vperm.xlu1 %1818, %v1746_v33   ;;  %400 = vperm.xlu0 %1817, %v1745_v34   ;;  %v131_v33 = vrot.slane %v21_v19, %v2067_v20  ;;  %v176_v34 = vrot.slane %v20_v18, %v2073_v23 }
  0x46   :  { %415 = vperm.xlu1 %1818, %v1748_v35   ;;  %410 = vperm.xlu0 %1817, %v1747_v36   ;;  %v180_v35 = vrot.slane %v21_v19, %v2073_v23  ;;  %v2093_v36 = vsub.s32 7, %v76_v14 }
  0x48   :  { %3079 = vst [vmem:[#allocation8_spill] sm:$0xff] %v2093_v36 }
  0x4a   :  { %582 = vperm.xlu1 %1818, %v572_v37   ;;  %577 = vperm.xlu0 %1817, %v571_v38   ;;  %v2096_v38 = vrot.slane %v20_v18, %v2076_v25 }
  0x4e   :  { %592 = vperm.xlu1 %1818, %v574_v39   ;;  %587 = vperm.xlu0 %1817, %v573_v40   ;;  %v2099_v39 = vrot.slane %v21_v19, %v2076_v25  ;;  %v2102_v40 = vrot.slane %v20_v18, %v2078_v26 }
  0x52   :  { %615 = vperm.xlu1 %1818, %v1750_v41   ;;  %610 = vperm.xlu0 %1817, %v1749_v42  }
  0x56   :  { %625 = vperm.xlu1 %1818, %v1752_v43   ;;  %620 = vperm.xlu0 %1817, %v1751_v44   ;;  %v2105_v43 = vrot.slane %v21_v19, %v2078_v26  ;;  %v2108_v44 = vrot.slane %v20_v18, %v2081_v28 }
  0x5a   :  { %656 = vperm.xlu1 %1818, %v1754_v45   ;;  %651 = vperm.xlu0 %1817, %v1753_v46  }
  0x5e   :  { %666 = vperm.xlu1 %1818, %v1756_v47   ;;  %661 = vperm.xlu0 %1817, %v1755_v48   ;;  %v2115_v48 = vrot.slane %v21_v19, %v2081_v28 }
  0x62   :  { %697 = vperm.xlu1 %1818, %v1758_v49   ;;  %692 = vperm.xlu0 %1817, %v1757_v50   ;;  %v2118_v49 = vrot.slane %v20_v18, %v2088_v32  ;;  %v2121_v50 = vrot.slane %v21_v19, %v2088_v32 }
  0x66   :  { %707 = vperm.xlu1 %1818, %v1760_v51   ;;  %702 = vperm.xlu0 %1817, %v1759_v52  }
  0x6a   :  { %725 = vperm.xlu1 %1818, %v27_v53   ;;  %720 = vperm.xlu0 %1817, %v26_v54   ;;  %v2124_v53 = vrot.slane %v20_v18, %v2093_v36  ;;  %v2127_v54 = vrot.slane %v21_v19, %v2093_v36 }
  0x6e   :  { %735 = vperm.xlu1 %1818, %v29_v55   ;;  %730 = vperm.xlu0 %1817, %v28_v56  }
  0x72   :  { %758 = vperm.xlu1 %1818, %v1762_v57   ;;  %753 = vperm.xlu0 %1817, %v1761_v58  }
  0x76   :  { %768 = vperm.xlu1 %1818, %v1764_v59   ;;  %763 = vperm.xlu0 %1817, %v1763_v60  }
  0x7a   :  { %799 = vperm.xlu1 %1818, %v1766_v61   ;;  %794 = vperm.xlu0 %1817, %v1765_v62  }
  0x81   :  { %v2042_v63 = vpop.permute.xlu1 %43  ;;  %v2044_v0 = vpop.permute.xlu0 %33 }
  0x85   :  { %v2046_v1 = vpop.permute.xlu1 %48  ;;  %v39_v2 = vpop.permute.xlu0 %38 }
  0x89   :  { %v63_v3 = vpop.permute.xlu1 %62  ;;  %v58_v4 = vpop.permute.xlu0 %57 }
  0x8a   :  { %v85_v37 = vmul.f32 %v78_v24, %v63_v3  ;;  %v86_v41 = vmul.f32 %v82_v27, %v63_v3  ;;  %v83_v42 = vmul.f32 %v78_v24, %v58_v4  ;;  %v84_v45 = vmul.f32 %v82_v27, %v58_v4 }
  0x8c   :  { %v93_v55 = vadd.f32 %v85_v37, %v39_v2  ;;  %v94_v59 = vadd.f32 %v86_v41, %v39_v2  ;;  %v91_v60 = vadd.f32 %v83_v42, %v2044_v0  ;;  %v92_v3 = vadd.f32 %v84_v45, %v2044_v0 }
  0x8d   :  { %v73_v5 = vpop.permute.xlu1 %72  ;;  %v68_v6 = vpop.permute.xlu0 %67 }
  0x8e   :  { %v89_v51 = vmul.f32 %v78_v24, %v73_v5  ;;  %v90_v52 = vmul.f32 %v82_v27, %v73_v5  ;;  %v87_v56 = vmul.f32 %v78_v24, %v68_v6  ;;  %v88_v57 = vmul.f32 %v82_v27, %v68_v6 }
  0x90   :  { %v97_v19 = vadd.f32 %v89_v51, %v2046_v1  ;;  %v98_v24 = vadd.f32 %v90_v52, %v2046_v1  ;;  %v96_v27 = vadd.f32 %v88_v57, %v2042_v63 }
  0x91   :  { %v112_v7 = vpop.permute.xlu1 %111  ;;  %v107_v8 = vpop.permute.xlu0 %106 }
  0x92   :  { %v134_v58 = vmul.f32 %v127_v29, %v112_v7  ;;  %v135_v61 = vmul.f32 %v131_v33, %v112_v7  ;;  %v132_v62 = vmul.f32 %v127_v29, %v107_v8  ;;  %v133_v4 = vmul.f32 %v131_v33, %v107_v8 }
  0x93   :  { %v95_v7 = vadd.f32 %v87_v56, %v2042_v63 }
  0x94   :  { %v142_v0 = vadd.f32 %v134_v58, %v93_v55  ;;  %v140_v37 = vadd.f32 %v132_v62, %v91_v60  ;;  %v141_v45 = vadd.f32 %v133_v4, %v92_v3 }
  0x95   :  { %v122_v9 = vpop.permute.xlu1 %121  ;;  %v2048_v10 = vpop.permute.xlu0 %116 }
  0x96   :  { %v138_v14 = vmul.f32 %v127_v29, %v122_v9  ;;  %v139_v5 = vmul.f32 %v131_v33, %v122_v9  ;;  %v136_v6 = vmul.f32 %v127_v29, %v2048_v10  ;;  %v137_v2 = vmul.f32 %v131_v33, %v2048_v10 }
  0x97   :  { %v143_v9 = vadd.f32 %v135_v61, %v94_v59 }
  0x98   :  { %v146_v51 = vadd.f32 %v138_v14, %v97_v19  ;;  %v147_v1 = vadd.f32 %v139_v5, %v98_v24  ;;  %v144_v33 = vadd.f32 %v136_v6, %v95_v7  ;;  %v145_v56 = vadd.f32 %v137_v2, %v96_v27 }
  0x99   :  { %v2050_v12 = vpop.permute.xlu1 %160  ;;  %v2052_v13 = vpop.permute.xlu0 %155 }
  0x9a   :  { %v183_v8 = vmul.f32 %v176_v34, %v2050_v12  ;;  %v184_v41 = vmul.f32 %v180_v35, %v2050_v12  ;;  %v181_v42 = vmul.f32 %v176_v34, %v2052_v13  ;;  %v182_v29 = vmul.f32 %v180_v35, %v2052_v13 }
  0x9c   :  { %v191_v57 = vadd.f32 %v183_v8, %v142_v0  ;;  %v192_v60 = vadd.f32 %v184_v41, %v143_v9  ;;  %v189_v61 = vadd.f32 %v181_v42, %v140_v37  ;;  %v190_v3 = vadd.f32 %v182_v29, %v141_v45 }
  0x9d   :  { %v2055_v15 = vpop.permute.xlu1 %170  ;;  %v2057_v16 = vpop.permute.xlu0 %165 }
  0x9e   :  { %v187_v63 = vmul.f32 %v176_v34, %v2055_v15  ;;  %v188_v55 = vmul.f32 %v180_v35, %v2055_v15  ;;  %v185_v58 = vmul.f32 %v176_v34, %v2057_v16  ;;  %v186_v12 = vmul.f32 %v180_v35, %v2057_v16 }
  0xa0   :  { %v195_v14 = vadd.f32 %v187_v63, %v146_v51  ;;  %v196_v5 = vadd.f32 %v188_v55, %v147_v1  ;;  %v193_v24 = vadd.f32 %v185_v58, %v144_v33  ;;  %v194_v6 = vadd.f32 %v186_v12, %v145_v56 }
  0xa1   :  { %v2069_v21 = vpop.permute.xlu1 %209  ;;  %v2071_v22 = vpop.permute.xlu0 %204 }
  0xa2   :  { %v232_v59 = vmul.f32 %v2096_v38, %v2069_v21  ;;  %v233_v13 = vmul.f32 %v2099_v39, %v2069_v21  ;;  %v230_v62 = vmul.f32 %v2096_v38, %v2071_v22  ;;  %v231_v15 = vmul.f32 %v2099_v39, %v2071_v22 }
  0xa4   :  { %v240_v22 = vadd.f32 %v232_v59, %v191_v57  ;;  %v241_v7 = vadd.f32 %v233_v13, %v192_v60  ;;  %v238_v27 = vadd.f32 %v230_v62, %v189_v61  ;;  %v239_v8 = vadd.f32 %v231_v15, %v190_v3 }
  0xa5   :  { %v2084_v30 = vpop.permute.xlu1 %219  ;;  %v2086_v31 = vpop.permute.xlu0 %214 }
  0xa6   :  { %v236_v34 = vmul.f32 %v2096_v38, %v2084_v30  ;;  %v237_v16 = vmul.f32 %v2099_v39, %v2084_v30  ;;  %v234_v21 = vmul.f32 %v2096_v38, %v2086_v31  ;;  %v235_v19 = vmul.f32 %v2099_v39, %v2086_v31 }
  0xa8   :  { %v244_v9 = vadd.f32 %v236_v34, %v195_v14  ;;  %v245_v38 = vadd.f32 %v237_v16, %v196_v5  ;;  %v242_v41 = vadd.f32 %v234_v21, %v193_v24  ;;  %v243_v42 = vadd.f32 %v235_v19, %v194_v6 }
  0xa9   :  { %v2110_v46 = vpop.permute.xlu1 %258  ;;  %v2112_v47 = vpop.permute.xlu0 %253 }
  0xaa   :  { %v281_v2 = vmul.f32 %v2102_v40, %v2110_v46  ;;  %v282_v30 = vmul.f32 %v2105_v43, %v2110_v46  ;;  %v279_v0 = vmul.f32 %v2102_v40, %v2112_v47  ;;  %v280_v31 = vmul.f32 %v2105_v43, %v2112_v47 }
  0xac   :  { %v289_v1 = vadd.f32 %v281_v2, %v240_v22  ;;  %v290_v56 = vadd.f32 %v282_v30, %v241_v7  ;;  %v287_v63 = vadd.f32 %v279_v0, %v238_v27  ;;  %v288_v57 = vadd.f32 %v280_v31, %v239_v8 }
  0xad   :  { %v2131_v11 = vpop.permute.xlu1 %268  ;;  %v2133_v18 = vpop.permute.xlu0 %263 }
  0xae   :  { %v285_v45 = vmul.f32 %v2102_v40, %v2131_v11  ;;  %v283_v47 = vmul.f32 %v2102_v40, %v2133_v18  ;;  %v286_v61 = vmul.f32 %v2105_v43, %v2131_v11  ;;  %v284_v13 = vmul.f32 %v2105_v43, %v2133_v18 }
  0xb0   :  { %v291_v16 = vadd.f32 %v283_v47, %v242_v41  ;;  %v294_v30 = vadd.f32 %v286_v61, %v245_v38  ;;  %v292_v0 = vadd.f32 %v284_v13, %v243_v42 }
  0xb1   :  { %v308_v52 = vpop.permute.xlu1 %307  ;;  %v303_v10 = vpop.permute.xlu0 %302 }
  0xb2   :  { %v330_v51 = vmul.f32 %v2108_v44, %v308_v52  ;;  %v331_v46 = vmul.f32 %v2115_v48, %v308_v52  ;;  %v328_v29 = vmul.f32 %v2108_v44, %v303_v10  ;;  %v329_v33 = vmul.f32 %v2115_v48, %v303_v10 }
  0xb3   :  { %v293_v10 = vadd.f32 %v285_v45, %v244_v9 }
  0xb4   :  { %v338_v62 = vadd.f32 %v330_v51, %v289_v1  ;;  %v339_v40 = vadd.f32 %v331_v46, %v290_v56  ;;  %v336_v3 = vadd.f32 %v328_v29, %v287_v63  ;;  %v337_v15 = vadd.f32 %v329_v33, %v288_v57 }
  0xb5   :  { %v2161_v35 = vpop.permute.xlu1 %317  ;;  %v313_v4 = vpop.permute.xlu0 %312 }
  0xb6   :  { %v332_v34 = vmul.f32 %v2108_v44, %v313_v4  ;;  %v335_v14 = vmul.f32 %v2115_v48, %v2161_v35  ;;  %v333_v5 = vmul.f32 %v2115_v48, %v313_v4 }
  0xb8   :  { %v340_v8 = vadd.f32 %v332_v34, %v291_v16  ;;  %v343_v41 = vadd.f32 %v335_v14, %v294_v30  ;;  %v341_v45 = vadd.f32 %v333_v5, %v292_v0  ;;  %v1767_v5 = vld [vmem:[%s3054_s3 + $0xb0] sm:$0xff]  ;;  %v1774_v30 = vld [vmem:[%s3054_s3 + $0xe8] sm:$0xff] }
  0xb9   :  { %v357_v39 = vpop.permute.xlu1 %356  ;;  %v352_v37 = vpop.permute.xlu0 %351  ;;  %v1775_v0 = vld [vmem:[%s3054_s3 + $0xf0] sm:$0xff] }
  0xba   :  { %v379_v55 = vmul.f32 %v2118_v49, %v357_v39  ;;  %v380_v58 = vmul.f32 %v2121_v50, %v357_v39  ;;  %v377_v12 = vmul.f32 %v2118_v49, %v352_v37  ;;  %v378_v59 = vmul.f32 %v2121_v50, %v352_v37 }
  0xbb   :  { %v334_v37 = vmul.f32 %v2108_v44, %v2161_v35 }
  0xbc   :  { %v387_v21 = vadd.f32 %v379_v55, %v338_v62  ;;  %v388_v19 = vadd.f32 %v380_v58, %v339_v40  ;;  %v385_v24 = vadd.f32 %v377_v12, %v336_v3  ;;  %v386_v11 = vadd.f32 %v378_v59, %v337_v15 }
  0xbd   :  { %v367_v60 = vpop.permute.xlu1 %366  ;;  %v362_v52 = vpop.permute.xlu0 %361  ;;  %v342_v35 = vadd.f32 %v334_v37, %v293_v10 }
  0xbe   :  { %v381_v6 = vmul.f32 %v2118_v49, %v362_v52  ;;  %v382_v48 = vmul.f32 %v2121_v50, %v362_v52  ;;  %v383_v51 = vmul.f32 %v2118_v49, %v367_v60  ;;  %v384_v29 = vmul.f32 %v2121_v50, %v367_v60 }
  0xc0   :  { %v389_v38 = vadd.f32 %v381_v6, %v340_v8  ;;  %v390_v56 = vadd.f32 %v382_v48, %v341_v45  ;;  %v392_v60 = vadd.f32 %v384_v29, %v343_v41  ;;  %v391_v52 = vadd.f32 %v383_v51, %v342_v35  ;;  %v1776_v8 = vld [vmem:[%s3054_s3 + $0xf8] sm:$0xff]  ;;  %v1102_v45 = vld [vmem:[%s3056_s2] sm:$0xff] }
  0xc1   :  { %v406_v22 = vpop.permute.xlu1 %405  ;;  %v401_v43 = vpop.permute.xlu0 %400  ;;  %v30_v51 = vld [vmem:[%s3052_s4 + $0x40] sm:$0xff] }
  0xc2   :  { %v428_v18 = vmul.f32 %v2124_v53, %v406_v22  ;;  %v429_v2 = vmul.f32 %v2127_v54, %v406_v22  ;;  %v426_v7 = vmul.f32 %v2124_v53, %v401_v43  ;;  %v427_v27 = vmul.f32 %v2127_v54, %v401_v43  ;;  %v1772_v43 = vld [vmem:[%s3054_s3 + $0xd8] sm:$0xff] }
  0xc4   :  { %v436_v4 = vadd.f32 %v428_v18, %v387_v21  ;;  %v437_v9 = vadd.f32 %v429_v2, %v388_v19  ;;  %v434_v31 = vadd.f32 %v426_v7, %v385_v24  ;;  %v435_v39 = vadd.f32 %v427_v27, %v386_v11  ;;  %v1768_v21 = vld [vmem:[%s3054_s3 + $0xb8] sm:$0xff]  ;;  %v1769_v19 = vld [vmem:[%s3054_s3 + $0xc0] sm:$0xff]  ;;  %v1770_v24 = vld [vmem:[%s3054_s3 + $0xc8] sm:$0xff] }
  0xc5   :  { %v416_v1 = vpop.permute.xlu1 %415  ;;  %v411_v46 = vpop.permute.xlu0 %410  ;;  %v1771_v11 = vld [vmem:[%s3054_s3 + $0xd0] sm:$0xff]  ;;  %v1773_v18 = vld [vmem:[%s3054_s3 + $0xe0] sm:$0xff] }
  0xc6   :  { %v442_v42 = vmax.f32 %v434_v31, 0.0  ;;  %v443_v33 = vmax.f32 %v435_v39, 0.0  ;;  %v444_v63 = vmax.f32 %v436_v4, 0.0  ;;  %v430_v47 = vmul.f32 %v2124_v53, %v411_v46  ;;  %v1777_v2 = vld [vmem:[%s3054_s3 + $0x100] sm:$0xff]  ;;  %v1779_v31 = vld [vmem:[%s3054_s3 + $0x110] sm:$0xff]  ;;  %v1780_v39 = vld [vmem:[%s3054_s3 + $0x118] sm:$0xff] }
  0xc7   :  { %v431_v55 = vmul.f32 %v2127_v54, %v411_v46  ;;  %v445_v57 = vmax.f32 %v437_v9, 0.0  ;;  %v433_v49 = vmul.f32 %v2127_v54, %v416_v1  ;;  %v432_v12 = vmul.f32 %v2124_v53, %v416_v1  ;;  %v1778_v9 = vld [vmem:[%s3054_s3 + $0x108] sm:$0xff] }
  0xc8   :  { %v2207_v58 = vmin.f32 %v442_v42, 6.0  ;;  %v2209_v44 = vmin.f32 %v443_v33, 6.0  ;;  %v438_v50 = vadd.f32 %v430_v47, %v389_v38  ;;  %v2215_v61 = vmin.f32 %v444_v63, 6.0  ;;  %v1781_v1 = vld [vmem:[%s3056_s2 + $0x8] sm:$0xff]  ;;  %v1782_v38 = vld [vmem:[%s3056_s2 + $0x10] sm:$0xff]  ;;  %v1783_v42 = vld [vmem:[%s3056_s2 + $0x18] sm:$0xff] }
  0xc9   :  { %v439_v59 = vadd.f32 %v431_v55, %v390_v56  ;;  %v2217_v13 = vmin.f32 %v445_v57, 6.0  ;;  %v441_v62 = vadd.f32 %v433_v49, %v392_v60  ;;  %v440_v3 = vadd.f32 %v432_v12, %v391_v52  ;;  %v2256_v6 = vpop.permute.xlu1 %582  ;;  %v2258_v22 = vpop.permute.xlu0 %577  ;;  %v1784_v33 = vld [vmem:[%s3056_s2 + $0x20] sm:$0xff]  ;;  %v1785_v47 = vld [vmem:[%s3056_s2 + $0x28] sm:$0xff]  ;;  %v1786_v55 = vld [vmem:[%s3056_s2 + $0x30] sm:$0xff] }
  0xca   :  { %485 = vrot.lane.b32.xlu0 %v2209_v44, %s1822_s19  ;;  %487 = vrot.lane.b32.xlu1 %v2207_v58, %s1822_s19  ;;  %v446_v54 = vmax.f32 %v438_v50, 0.0 }
  0xcb   :  { %v447_v40 = vmax.f32 %v439_v59, 0.0  ;;  %v449_v53 = vmax.f32 %v441_v62, 0.0  ;;  %v448_v15 = vmax.f32 %v440_v3, 0.0  ;;  %v3080_v3 = vlaneseq }
  0xcc   :  { %v2223_v34 = vmin.f32 %v446_v54, 6.0 }
  0xcd   :  { %v2221_v10 = vmin.f32 %v447_v40, 6.0  ;;  %v2227_v16 = vmin.f32 %v449_v53, 6.0  ;;  %v2229_v14 = vmin.f32 %v448_v15, 6.0  ;;  %v2269_v7 = vpop.permute.xlu1 %592  ;;  %v2271_v27 = vpop.permute.xlu0 %587  ;;  %v2336_v54 = vand.u32 127, %v3080_v3 }
  0xce   :  { %489 = vrot.lane.b32.xlu0 %v2217_v13, %s1822_s19  ;;  %491 = vrot.lane.b32.xlu1 %v2215_v61, %s1822_s19 }
  0xd1   :  { %v2282_v48 = vpop.permute.xlu1 %615  ;;  %v2284_v4 = vpop.permute.xlu0 %610 }
  0xd2   :  { %493 = vrot.lane.b32.xlu0 %v2221_v10, %s1822_s19  ;;  %495 = vrot.lane.b32.xlu1 %v2223_v34, %s1822_s19  ;;  %v631_v25 = vmul.f32 %v2282_v48, %v2217_v13 }
  0xd5   :  { %v2295_v37 = vpop.permute.xlu1 %625  ;;  %v2297_v41 = vpop.permute.xlu0 %620 }
  0xd6   :  { %497 = vrot.lane.b32.xlu0 %v2227_v16, %s1822_s19  ;;  %499 = vrot.lane.b32.xlu1 %v2229_v14, %s1822_s19 }
  0xd9   :  { %v2308_v46 = vpop.permute.xlu1 %656  ;;  %v2310_v29 = vpop.permute.xlu0 %651 }
  0xda   :  { %530 = vrot.lane.b32.xlu0 %v2207_v58, %s1823_s20  ;;  %532 = vrot.lane.b32.xlu1 %v2209_v44, %s1823_s20 }
  0xdd   :  { %v2321_v56 = vpop.permute.xlu1 %666  ;;  %v2323_v63 = vpop.permute.xlu0 %661 }
  0xde   :  { %534 = vrot.lane.b32.xlu0 %v2215_v61, %s1823_s20  ;;  %536 = vrot.lane.b32.xlu1 %v2217_v13, %s1823_s20 }
  0xe1   :  { %v698_v57 = vpop.permute.xlu1 %697  ;;  %v693_v49 = vpop.permute.xlu0 %692 }
  0xe2   :  { %538 = vrot.lane.b32.xlu0 %v2223_v34, %s1823_s20  ;;  %540 = vrot.lane.b32.xlu1 %v2221_v10, %s1823_s20 }
  0xe5   :  { %v2331_v35 = vpop.permute.xlu1 %707  ;;  %v703_v12 = vpop.permute.xlu0 %702 }
  0xe6   :  { %542 = vrot.lane.b32.xlu0 %v2229_v14, %s1823_s20  ;;  %544 = vrot.lane.b32.xlu1 %v2227_v16, %s1823_s20 }
  0xe9   :  { %v726_v50 = vpop.permute.xlu1 %725  ;;  %v721_v59 = vpop.permute.xlu0 %720 }
  0xea   :  { %804 = vperm.xlu0 %1817, %v1767_v5   ;;  %809 = vperm.xlu1 %1818, %v1768_v21   ;;  %v2341_v5 = vadd.s32 128, %v2336_v54  ;;  %v463_v21 = vand.u32 15, %v2336_v54 }
  0xec   :  { %vm2349_vm1 = vcmp.ge.s32.totalorder %v463_v21, 1  ;;  %vm2403_vm3 = vcmp.le.s32.totalorder %v463_v21, 14 }
  0xed   :  { %v2333_v60 = vpop.permute.xlu1 %735  ;;  %v731_v52 = vpop.permute.xlu0 %730 }
  0xee   :  { %835 = vperm.xlu0 %1817, %v1769_v19   ;;  %840 = vperm.xlu1 %1818, %v1770_v24   ;;  %v464_v19 = vand.u32 15, %v2341_v5 }
  0xf0   :  { %vm2353_vm2 = vcmp.ge.s32.totalorder %v464_v19, 1  ;;  %vm2423_vm5 = vcmp.le.s32.totalorder %v464_v19, 14 }
  0xf1   :  { %v759_v62 = vpop.permute.xlu1 %758  ;;  %v754_v40 = vpop.permute.xlu0 %753 }
  0xf2   :  { %845 = vperm.xlu0 %1817, %v1771_v11   ;;  %850 = vperm.xlu1 %1818, %v1772_v43  }
  0xf5   :  { %v2338_v53 = vpop.permute.xlu1 %768  ;;  %v764_v15 = vpop.permute.xlu0 %763 }
  0xf6   :  { %868 = vperm.xlu0 %1817, %v1773_v18   ;;  %909 = vperm.xlu1 %1818, %v1777_v2   ;;  %v778_v19 = vmul.f32 %v2338_v53, %v2227_v16 }
  0xf9   :  { %v2345_v24 = vpop.permute.xlu1 %799  ;;  %v2347_v11 = vpop.permute.xlu0 %794 }
  0xfa   :  { %873 = vperm.xlu0 %1817, %v1774_v30   ;;  %878 = vperm.xlu1 %1818, %v1775_v0  }
  0xfe   :  { %883 = vperm.xlu0 %1817, %v1776_v8   ;;  %914 = vperm.xlu1 %1818, %v1778_v9  }
 0x102   :  { %919 = vperm.xlu0 %1817, %v1779_v31   ;;  %924 = vperm.xlu1 %1818, %v1780_v39  }
 0x106   :  { %1105 = vperm.xlu0 %1817, %v1102_v45   ;;  %1099 = vperm.xlu1 %1818, %v30_v51  }
 0x10a   :  { %1124 = vperm.xlu0 %1817, %v1781_v1   ;;  %1143 = vperm.xlu1 %1818, %v1782_v38   ;;  %v771_v38 = vmul.f32 %v754_v40, %v2207_v58 }
 0x10e   :  { %1162 = vperm.xlu0 %1817, %v1783_v42   ;;  %1181 = vperm.xlu1 %1818, %v1784_v33   ;;  %v772_v42 = vmul.f32 %v754_v40, %v2209_v44 }
 0x112   :  { %1200 = vperm.xlu0 %1817, %v1785_v47   ;;  %1219 = vperm.xlu1 %1818, %v1786_v55  }
 0x13c   :  { %v486_v2 = vpop.permute.xlu0 %485  ;;  %v488_v30 = vpop.permute.xlu1 %487 }
 0x13d   :  { %v502_v0 = vsel %vm501_vm0, %v486_v2, %v488_v30  ;;  %v503_v8 = vsel %vm501_vm0, %v488_v30, %v486_v2 }
 0x13e   :  { %v2361_v9 = vsel %vm2349_vm1, %v502_v0, 0.0  ;;  %v2365_v31 = vsel %vm2353_vm2, %v503_v8, 0.0 }
 0x13f   :  { %v710_v39 = vmul.f32 %v693_v49, %v2361_v9  ;;  %v711_v45 = vmul.f32 %v693_v49, %v2365_v31 }
 0x140   :  { %v490_v51 = vpop.permute.xlu0 %489  ;;  %v492_v1 = vpop.permute.xlu1 %491 }
 0x141   :  { %v738_v33 = vadd.f32 %v721_v59, %v710_v39  ;;  %v739_v47 = vadd.f32 %v721_v59, %v711_v45  ;;  %v504_v55 = vsel %vm501_vm0, %v490_v51, %v492_v1  ;;  %v505_v3 = vsel %vm501_vm0, %v492_v1, %v490_v51 }
 0x142   :  { %v2375_v2 = vsel %vm2349_vm1, %v504_v55, 0.0  ;;  %v2379_v30 = vsel %vm2353_vm2, %v505_v3, 0.0  ;;  %v773_v45 = vmul.f32 %v759_v62, %v2215_v61  ;;  %v774_v51 = vmul.f32 %v759_v62, %v2217_v13 }
 0x143   :  { %v2381_v49 = vadd.f32 %v771_v38, %v738_v33  ;;  %v2383_v0 = vadd.f32 %v772_v42, %v739_v47  ;;  %v712_v40 = vmul.f32 %v698_v57, %v2375_v2  ;;  %v713_v59 = vmul.f32 %v698_v57, %v2379_v30 }
 0x144   :  { %v494_v8 = vpop.permute.xlu0 %493  ;;  %v496_v39 = vpop.permute.xlu1 %495 }
 0x145   :  { %v740_v1 = vadd.f32 %v726_v50, %v712_v40  ;;  %v741_v55 = vadd.f32 %v726_v50, %v713_v59  ;;  %v506_v36 = vsel %vm501_vm0, %v494_v8, %v496_v39  ;;  %v507_v3 = vsel %vm501_vm0, %v496_v39, %v494_v8 }
 0x146   :  { %v2393_v38 = vsel %vm2349_vm1, %v506_v36, 0.0  ;;  %v2397_v42 = vsel %vm2353_vm2, %v507_v3, 0.0  ;;  %v775_v3 = vmul.f32 %v764_v15, %v2223_v34 }
 0x147   :  { %v781_v33 = vadd.f32 %v773_v45, %v740_v1  ;;  %v782_v47 = vadd.f32 %v774_v51, %v741_v55  ;;  %v714_v32 = vmul.f32 %v703_v12, %v2393_v38  ;;  %v715_v62 = vmul.f32 %v703_v12, %v2397_v42 }
 0x148   :  { %v498_v57 = vpop.permute.xlu0 %497  ;;  %v500_v50 = vpop.permute.xlu1 %499  ;;  %v776_v45 = vmul.f32 %v764_v15, %v2221_v10 }
 0x149   :  { %v508_v40 = vsel %vm501_vm0, %v498_v57, %v500_v50  ;;  %v509_v59 = vsel %vm501_vm0, %v500_v50, %v498_v57  ;;  %v742_v8 = vadd.f32 %v731_v52, %v714_v32  ;;  %v743_v39 = vadd.f32 %v731_v52, %v715_v62 }
 0x14a   :  { %v2411_v51 = vsel %vm2349_vm1, %v508_v40, 0.0  ;;  %v2415_v12 = vsel %vm2353_vm2, %v509_v59, 0.0  ;;  %v595_v32 = vmul.f32 %v2258_v22, %v2361_v9  ;;  %v628_v50 = vmul.f32 %v2284_v4, %v2207_v58 }
 0x14b   :  { %v716_v52 = vmul.f32 %v2331_v35, %v2411_v51  ;;  %v717_v21 = vmul.f32 %v2331_v35, %v2415_v12  ;;  %v783_v57 = vadd.f32 %v775_v3, %v742_v8  ;;  %v784_v62 = vadd.f32 %v776_v45, %v743_v39 }
 0x14c   :  { %v531_v1 = vpop.permute.xlu0 %530  ;;  %v533_v43 = vpop.permute.xlu1 %532  ;;  %v777_v35 = vmul.f32 %v2338_v53, %v2229_v14  ;;  %v636_v3 = vadd.f32 %v628_v50, %v595_v32 }
 0x14d   :  { %v547_v55 = vsel %vm546_vm4, %v531_v1, %v533_v43  ;;  %v548_v18 = vsel %vm546_vm4, %v533_v43, %v531_v1  ;;  %v744_v40 = vadd.f32 %v2333_v60, %v716_v52  ;;  %v745_v59 = vadd.f32 %v2333_v60, %v717_v21 }
 0x14e   :  { %v2439_v28 = vsel %vm2403_vm3, %v547_v55, 0.0  ;;  %v564_v8 = vsel %vm2423_vm5, %v548_v18, 0.0 }
 0x14f   :  { %v669_v45 = vmul.f32 %v2310_v29, %v2439_v28  ;;  %v812_v60 = vmul.f32 %v2347_v11, %v2439_v28  ;;  %v813_v1 = vmul.f32 %v2347_v11, %v564_v8  ;;  %v785_v43 = vadd.f32 %v777_v35, %v744_v40 }
 0x150   :  { %v535_v39 = vpop.permute.xlu0 %534  ;;  %v537_v52 = vpop.permute.xlu1 %536  ;;  %v786_v55 = vadd.f32 %v778_v19, %v745_v59 }
 0x151   :  { %v549_v53 = vsel %vm546_vm4, %v535_v39, %v537_v52  ;;  %v550_v21 = vsel %vm546_vm4, %v537_v52, %v535_v39  ;;  %v2450_v26 = vadd.f32 %v669_v45, %v636_v3  ;;  %v2467_v40 = vadd.f32 %v812_v60, %v2381_v49 }
 0x152   :  { %v2454_v32 = vsel %vm2403_vm3, %v549_v53, 0.0  ;;  %v2458_v18 = vsel %vm2423_vm5, %v550_v21, 0.0  ;;  %v2470_v59 = vadd.f32 %v813_v1, %v2383_v0 }
 0x153   :  { %v814_v11 = vmul.f32 %v2345_v24, %v2454_v32  ;;  %v815_v50 = vmul.f32 %v2345_v24, %v2458_v18  ;;  %961 = vrot.lane.b32.xlu1 %v2450_v26, %s1824_s11  ;;  %v672_v23 = vmul.f32 %v2308_v46, %v2458_v18 }
 0x154   :  { %v539_v39 = vpop.permute.xlu0 %538  ;;  %v541_v3 = vpop.permute.xlu1 %540 }
 0x155   :  { %v2472_v35 = vadd.f32 %v814_v11, %v781_v33  ;;  %v2474_v19 = vadd.f32 %v815_v50, %v782_v47  ;;  %v551_v24 = vsel %vm546_vm4, %v539_v39, %v541_v3  ;;  %v552_v53 = vsel %vm546_vm4, %v541_v3, %v539_v39 }
 0x156   :  { %v2482_v0 = vsel %vm2403_vm3, %v551_v24, 0.0  ;;  %v2486_v33 = vsel %vm2423_vm5, %v552_v53, 0.0 }
 0x157   :  { %3089 = vst [vmem:[#allocation9_spill] sm:$0xff] %v2472_v35  ;;  %3090 = vst [vmem:[#allocation10_spill] sm:$0xff] %v2474_v19 }
 0x158   :  { %v543_v45 = vpop.permute.xlu0 %542  ;;  %v545_v52 = vpop.permute.xlu1 %544 }
 0x159   :  { %v553_v21 = vsel %vm546_vm4, %v543_v45, %v545_v52  ;;  %v554_v49 = vsel %vm546_vm4, %v545_v52, %v543_v45 }
 0x15a   :  { %v2490_v60 = vsel %vm2403_vm3, %v553_v21, 0.0  ;;  %v2494_v1 = vsel %vm2423_vm5, %v554_v49, 0.0 }
 0x169   :  { %v805_v47 = vpop.permute.xlu0 %804  ;;  %v810_v39 = vpop.permute.xlu1 %809 }
 0x16a   :  { %v816_v11 = vmul.f32 %v805_v47, %v2482_v0  ;;  %v817_v50 = vmul.f32 %v805_v47, %v2486_v33  ;;  %v818_v3 = vmul.f32 %v810_v39, %v2490_v60  ;;  %v819_v45 = vmul.f32 %v810_v39, %v2494_v1 }
 0x16c   :  { %v2500_v52 = vadd.f32 %v816_v11, %v783_v57  ;;  %v2502_v24 = vadd.f32 %v817_v50, %v784_v62  ;;  %v2504_v36 = vadd.f32 %v818_v3, %v785_v43  ;;  %v2506_v53 = vadd.f32 %v819_v45, %v786_v55 }
 0x16d   :  { %v2508_v15 = vpop.permute.xlu0 %835  ;;  %v2510_v21 = vpop.permute.xlu1 %840  ;;  %v596_v43 = vmul.f32 %v2258_v22, %v2365_v31  ;;  %v629_v3 = vmul.f32 %v2284_v4, %v2209_v44  ;;  %v670_v45 = vmul.f32 %v2310_v29, %v564_v8  ;;  %v597_v22 = vmul.f32 %v2256_v6, %v2375_v2 }
 0x16e   :  { %3091 = vst [vmem:[#allocation11_spill] sm:$0xff] %v2500_v52  ;;  %3092 = vst [vmem:[#allocation12_spill] sm:$0xff] %v2502_v24  ;;  %v854_v39 = vmul.f32 %v2508_v15, %v2365_v31  ;;  %v630_v31 = vmul.f32 %v2282_v48, %v2215_v61 }
 0x16f   :  { %3093 = vst [vmem:[#allocation13_spill] sm:$0xff] %v2504_v36  ;;  %3094 = vst [vmem:[#allocation14_spill] sm:$0xff] %v2506_v53  ;;  %v637_v52 = vadd.f32 %v629_v3, %v596_v43 }
 0x170   :  { %v638_v35 = vadd.f32 %v630_v31, %v597_v22 }
 0x171   :  { %v2512_v49 = vpop.permute.xlu0 %845  ;;  %v851_v47 = vpop.permute.xlu1 %850  ;;  %v678_v29 = vadd.f32 %v670_v45, %v637_v52 }
 0x175   :  { %v2514_v19 = vpop.permute.xlu0 %868  ;;  %v2520_v62 = vpop.permute.xlu1 %909 }
 0x176   :  { %v887_v57 = vmul.f32 %v2514_v19, %v2209_v44  ;;  %v928_v11 = vmul.f32 %v2520_v62, %v564_v8  ;;  %v856_v44 = vmul.f32 %v2510_v21, %v2379_v30  ;;  %v671_v8 = vmul.f32 %v2308_v46, %v2454_v32 }
 0x177   :  { %v632_v46 = vmul.f32 %v2297_v41, %v2223_v34 }
 0x178   :  { %v895_v55 = vadd.f32 %v887_v57, %v854_v39  ;;  %v859_v39 = vmul.f32 %v851_v47, %v2411_v51 }
 0x179   :  { %v2525_v50 = vpop.permute.xlu0 %873  ;;  %v2532_v36 = vpop.permute.xlu1 %878 }
 0x17a   :  { %v2530_v53 = vadd.f32 %v928_v11, %v895_v55  ;;  %v889_v24 = vmul.f32 %v2525_v50, %v2217_v13  ;;  %v598_v55 = vmul.f32 %v2256_v6, %v2379_v30  ;;  %v891_v52 = vmul.f32 %v2532_v36, %v2221_v10 }
 0x17b   :  { %v2567_v30 = vadd.f32 %v671_v8, %v638_v35  ;;  %v600_v13 = vmul.f32 %v2271_v27, %v2397_v42  ;;  %v633_v35 = vmul.f32 %v2297_v41, %v2221_v10  ;;  %v860_v41 = vmul.f32 %v851_v47, %v2415_v12 }
 0x17c   :  { %959 = vrot.lane.b32.xlu0 %v2530_v53, %s1824_s11  ;;  %v897_v11 = vadd.f32 %v889_v24, %v856_v44  ;;  %v858_v24 = vmul.f32 %v2512_v49, %v2397_v42  ;;  %v639_v31 = vadd.f32 %v631_v25, %v598_v55  ;;  %v599_v44 = vmul.f32 %v2271_v27, %v2393_v38 }
 0x17d   :  { %v884_v4 = vpop.permute.xlu0 %883  ;;  %v2548_v43 = vpop.permute.xlu1 %914  ;;  %v673_v25 = vmul.f32 %v2323_v63, %v2482_v0  ;;  %v675_v55 = vmul.f32 %v2321_v56, %v2490_v60 }
 0x17e   :  { %v892_v57 = vmul.f32 %v884_v4, %v2229_v14  ;;  %v930_v3 = vmul.f32 %v2548_v43, %v2458_v18  ;;  %v899_v48 = vadd.f32 %v891_v52, %v858_v24  ;;  %v680_v18 = vadd.f32 %v672_v23, %v639_v31  ;;  %v1791_v31 = vld [vmem:[%s3056_s2 + $0x58] sm:$0xff] }
 0x17f   :  { %v640_v42 = vadd.f32 %v632_v46, %v599_v44  ;;  %v601_v23 = vmul.f32 %v2269_v7, %v2411_v51  ;;  %v886_v51 = vmul.f32 %v2514_v19, %v2207_v58  ;;  %v853_v52 = vmul.f32 %v2508_v15, %v2361_v9  ;;  %v1801_v46 = vld [vmem:[%s3056_s2 + $0xa8] sm:$0xff] }
 0x180   :  { %v2556_v45 = vadd.f32 %v892_v57, %v859_v39  ;;  %963 = vrot.lane.b32.xlu0 %v678_v29, %s1824_s11  ;;  %v2563_v20 = vadd.f32 %v930_v3, %v897_v11  ;;  %v674_v29 = vmul.f32 %v2323_v63, %v2486_v33  ;;  %v893_v39 = vmul.f32 %v884_v4, %v2227_v16 }
 0x181   :  { %v2565_v6 = vpop.permute.xlu0 %919  ;;  %v2591_v27 = vpop.permute.xlu1 %924  ;;  %v641_v57 = vadd.f32 %v633_v35, %v600_v13  ;;  %v2599_v10 = vadd.f32 %v673_v25, %v640_v42  ;;  %v602_v11 = vmul.f32 %v2269_v7, %v2415_v12  ;;  %v676_v24 = vmul.f32 %v2321_v56, %v2494_v1  ;;  %v1790_v56 = vld [vmem:[%s3056_s2 + $0x50] sm:$0xff]  ;;  %v1803_v25 = vld [vmem:[%s3056_s2 + $0xb8] sm:$0xff] }
 0x182   :  { %v932_v22 = vmul.f32 %v2565_v6, %v2486_v33  ;;  %965 = vrot.lane.b32.xlu1 %v2563_v20, %s1824_s11  ;;  %v934_v63 = vmul.f32 %v2591_v27, %v2494_v1  ;;  %v634_v33 = vmul.f32 %v2295_v37, %v2229_v14  ;;  %v901_v3 = vadd.f32 %v893_v39, %v860_v41  ;;  %v1789_v1 = vld [vmem:[%s3056_s2 + $0x48] sm:$0xff]  ;;  %v1802_v13 = vld [vmem:[%s3056_s2 + $0xb0] sm:$0xff] }
 0x183   :  { %v682_v4 = vadd.f32 %v674_v29, %v641_v57  ;;  %v635_v14 = vmul.f32 %v2295_v37, %v2227_v16  ;;  %v894_v7 = vadd.f32 %v886_v51, %v853_v52  ;;  %v927_v9 = vmul.f32 %v2520_v62, %v2439_v28  ;;  %v1788_v28 = vld [vmem:[%s3056_s2 + $0x40] sm:$0xff]  ;;  %v1787_v37 = vld [vmem:[%s3056_s2 + $0x38] sm:$0xff]  ;;  %v1806_v35 = vld [vmem:[%s3056_s2 + $0xd0] sm:$0xff] }
 0x184   :  { %967 = vrot.lane.b32.xlu0 %v2567_v30, %s1824_s11  ;;  %v2589_v8 = vadd.f32 %v932_v22, %v899_v48  ;;  %v642_v47 = vadd.f32 %v634_v33, %v601_v23  ;;  %v2621_v58 = vadd.f32 %v934_v63, %v901_v3  ;;  %v855_v62 = vmul.f32 %v2510_v21, %v2375_v2  ;;  %v1793_v2 = vld [vmem:[%s3056_s2 + $0x68] sm:$0xff]  ;;  %v1794_v21 = vld [vmem:[%s3056_s2 + $0x70] sm:$0xff]  ;;  %v1807_v29 = vld [vmem:[%s3056_s2 + $0xd8] sm:$0xff] }
 0x185   :  { %v643_v12 = vadd.f32 %v635_v14, %v602_v11  ;;  %v935_v16 = vadd.f32 %v927_v9, %v894_v7  ;;  %v929_v22 = vmul.f32 %v2548_v43, %v2454_v32  ;;  %v890_v32 = vmul.f32 %v2532_v36, %v2223_v34  ;;  %v1796_v34 = vld [vmem:[%s3056_s2 + $0x80] sm:$0xff]  ;;  %v1106_v42 = vpop.permute.xlu0 %1105  ;;  %v1810_v39 = vld [vmem:[%s3056_s2 + $0xf0] sm:$0xff]  ;;  %v1811_v57 = vld [vmem:[%s3056_s2 + $0xf8] sm:$0xff]  ;;  %v1100_v23 = vpop.permute.xlu1 %1099 }
 0x186   :  { %969 = vrot.lane.b32.xlu1 %v680_v18, %s1824_s11  ;;  %v2623_v19 = vadd.f32 %v675_v55, %v642_v47  ;;  %v931_v43 = vmul.f32 %v2565_v6, %v2482_v0  ;;  %v1797_v0 = vld [vmem:[%s3056_s2 + $0x88] sm:$0xff]  ;;  %v1799_v6 = vld [vmem:[%s3056_s2 + $0x98] sm:$0xff]  ;;  %v933_v48 = vmul.f32 %v2591_v27, %v2490_v60  ;;  %v1804_v60 = vld [vmem:[%s3056_s2 + $0xc0] sm:$0xff]  ;;  %v461_v7 = vshra.s32 %v2336_v54, 4 }
 0x187   :  { %v684_v15 = vadd.f32 %v676_v24, %v643_v12  ;;  %v1809_v27 = vld [vmem:[%s3056_s2 + $0xe8] sm:$0xff]  ;;  %v462_v12 = vshra.s32 %v2341_v5, 4 }
 0x188   :  { %971 = vrot.lane.b32.xlu0 %v2589_v8, %s1824_s11  ;;  %v941_v18 = vadd.f32 %v933_v48, %v2556_v45  ;;  %v1805_v45 = vld [vmem:[%s3056_s2 + $0xc8] sm:$0xff]  ;;  %vm2768_vm7 = vcmp.ge.s32.totalorder %v461_v7, 1  ;;  %vm2784_vm10 = vcmp.le.s32.totalorder %v461_v7, 14 }
 0x189   :  { %v2742_v41 = vpop.permute.xlu1 %1143  ;;  %vm2773_vm8 = vcmp.ge.s32.totalorder %v462_v12, 1  ;;  %vm2788_vm11 = vcmp.le.s32.totalorder %v462_v12, 14 }
 0x18a   :  { %973 = vrot.lane.b32.xlu1 %v2599_v10, %s1824_s11 }
 0x18c   :  { %975 = vrot.lane.b32.xlu0 %v682_v4, %s1824_s11 }
 0x18d   :  { %v2746_v33 = vpop.permute.xlu1 %1181 }
 0x18e   :  { %977 = vrot.lane.b32.xlu1 %v2621_v58, %s1824_s11 }
 0x190   :  { %979 = vrot.lane.b32.xlu0 %v2623_v19, %s1824_s11 }
 0x191   :  { %v2750_v55 = vpop.permute.xlu1 %1219 }
 0x192   :  { %981 = vrot.lane.b32.xlu1 %v684_v15, %s1824_s11 }
 0x194   :  { %1024 = vrot.lane.b32.xlu0 %v935_v16, %s1825_s12 }
 0x196   :  { %1026 = vrot.lane.b32.xlu1 %v2530_v53, %s1825_s12  ;;  %v1792_v53 = vld [vmem:[%s3056_s2 + $0x60] sm:$0xff] }
 0x198   :  { %1028 = vrot.lane.b32.xlu0 %v2450_v26, %s1825_s12  ;;  %v888_v26 = vmul.f32 %v2525_v50, %v2215_v61  ;;  %v1795_v50 = vld [vmem:[%s3056_s2 + $0x78] sm:$0xff] }
 0x19a   :  { %1257 = vperm.xlu1 %1818, %v1788_v28   ;;  %v896_v44 = vadd.f32 %v888_v26, %v855_v62 }
 0x19c   :  { %1238 = vperm.xlu0 %1817, %v1787_v37   ;;  %v937_v61 = vadd.f32 %v929_v22, %v896_v44  ;;  %v3114_v37 = vld [vmem:[#allocation13_spill] sm:$0xff] }
 0x19e   :  { %1295 = vperm.xlu1 %1818, %v1790_v56  }
 0x1a0   :  { %1276 = vperm.xlu0 %1817, %v1789_v1  }
 0x1a2   :  { %1333 = vperm.xlu1 %1818, %v1792_v53  }
 0x1a4   :  { %1314 = vperm.xlu0 %1817, %v1791_v31  }
 0x1a6   :  { %1030 = vrot.lane.b32.xlu1 %v937_v61, %s1825_s12 }
 0x1a8   :  { %1032 = vrot.lane.b32.xlu0 %v2563_v20, %s1825_s12  ;;  %v857_v20 = vmul.f32 %v2512_v49, %v2393_v38  ;;  %v1798_v38 = vld [vmem:[%s3056_s2 + $0x90] sm:$0xff]  ;;  %v1800_v49 = vld [vmem:[%s3056_s2 + $0xa0] sm:$0xff] }
 0x1aa   :  { %1034 = vrot.lane.b32.xlu1 %v2567_v30, %s1825_s12  ;;  %v898_v30 = vadd.f32 %v890_v32, %v857_v20 }
 0x1ac   :  { %1352 = vperm.xlu0 %1817, %v1793_v2   ;;  %v939_v36 = vadd.f32 %v931_v43, %v898_v30 }
 0x1ae   :  { %1371 = vperm.xlu1 %1818, %v1794_v21  }
 0x1b0   :  { %1390 = vperm.xlu0 %1817, %v1795_v50  }
 0x1b2   :  { %1409 = vperm.xlu1 %1818, %v1796_v34  }
 0x1b4   :  { %1036 = vrot.lane.b32.xlu0 %v939_v36, %s1825_s12 }
 0x1b6   :  { %1038 = vrot.lane.b32.xlu1 %v2589_v8, %s1825_s12  ;;  %v1808_v8 = vld [vmem:[%s3056_s2 + $0xe0] sm:$0xff] }
 0x1b8   :  { %1040 = vrot.lane.b32.xlu0 %v2599_v10, %s1825_s12  ;;  %v1125_v10 = vpop.permute.xlu0 %1124 }
 0x1ba   :  { %1447 = vperm.xlu1 %1818, %v1798_v38  }
 0x1bc   :  { %1428 = vperm.xlu0 %1817, %v1797_v0   ;;  %v2744_v63 = vpop.permute.xlu0 %1162 }
 0x1be   :  { %1485 = vperm.xlu1 %1818, %v1800_v49   ;;  %v3103_v49 = vld [vmem:[#allocation2_spill] sm:$0xff] }
 0x1c0   :  { %1466 = vperm.xlu0 %1817, %v1799_v6   ;;  %v2748_v4 = vpop.permute.xlu0 %1200 }
 0x1c2   :  { %1523 = vperm.xlu1 %1818, %v1802_v13  }
 0x1c4   :  { %1504 = vperm.xlu0 %1817, %v1801_v46  }
 0x1c5   :  { %v962_v11 = vpop.permute.xlu1 %961 }
 0x1c6   :  { %1042 = vrot.lane.b32.xlu1 %v941_v18, %s1825_s12 }
 0x1c8   :  { %1044 = vrot.lane.b32.xlu0 %v2621_v58, %s1825_s12 }
 0x1ca   :  { %1046 = vrot.lane.b32.xlu1 %v2623_v19, %s1825_s12 }
 0x1cc   :  { %1542 = vperm.xlu0 %1817, %v1803_v25   ;;  %v3104_v25 = vld [vmem:[#allocation3_spill] sm:$0xff] }
 0x1ce   :  { %1561 = vperm.xlu1 %1818, %v1804_v60  }
 0x1d0   :  { %1580 = vperm.xlu0 %1817, %v1805_v45  }
 0x1d2   :  { %1599 = vperm.xlu1 %1818, %v1806_v35  }
 0x1d4   :  { %1618 = vperm.xlu0 %1817, %v1807_v29  }
 0x1d6   :  { %1637 = vperm.xlu1 %1818, %v1808_v8  }
 0x1d8   :  { %1656 = vperm.xlu0 %1817, %v1809_v27  }
 0x1da   :  { %1675 = vperm.xlu1 %1818, %v1810_v39  }
 0x1dc   :  { %1694 = vperm.xlu0 %1817, %v1811_v57   ;;  %v3105_v57 = vld [vmem:[#allocation4_spill] sm:$0xff] }
 0x1ee   :  { %v960_v51 = vpop.permute.xlu0 %959 }
 0x1ef   :  { %v984_v28 = vsel %vm983_vm6, %v960_v51, %v962_v11 }
 0x1f0   :  { %v1000_v5 = vsel %vm2768_vm7, %v984_v28, 0.0 }
 0x1f1   :  { %v1008_v31 = vadd.f32 %v1000_v5, %v2467_v40 }
 0x1f2   :  { %v964_v3 = vpop.permute.xlu0 %963 }
 0x1f3   :  { %v985_v56 = vsel %vm983_vm6, %v962_v11, %v964_v3 }
 0x1f4   :  { %v966_v47 = vpop.permute.xlu1 %965  ;;  %v1001_v26 = vsel %vm2773_vm8, %v985_v56, 0.0  ;;  %v3106_v56 = vld [vmem:[#allocation5_spill] sm:$0xff] }
 0x1f5   :  { %v1009_v2 = vadd.f32 %v1001_v26, %v2470_v59 }
 0x1f6   :  { %v2752_v52 = vpop.permute.xlu0 %967 }
 0x1f7   :  { %v986_v5 = vsel %vm983_vm6, %v966_v47, %v2752_v52 }
 0x1f8   :  { %v2754_v14 = vpop.permute.xlu1 %969 }
 0x1f9   :  { %v987_v47 = vsel %vm983_vm6, %v2752_v52, %v2754_v14 }
 0x1fa   :  { %v2756_v24 = vpop.permute.xlu0 %971 }
 0x1fc   :  { %v2758_v58 = vpop.permute.xlu1 %973 }
 0x1fe   :  { %v2760_v19 = vpop.permute.xlu0 %975 }
 0x200   :  { %v2764_v9 = vpop.permute.xlu1 %977 }
 0x202   :  { %v2766_v15 = vpop.permute.xlu0 %979 }
 0x204   :  { %v2778_v54 = vpop.permute.xlu1 %981 }
 0x206   :  { %v1025_v1 = vpop.permute.xlu0 %1024 }
 0x208   :  { %v1027_v62 = vpop.permute.xlu1 %1026 }
 0x209   :  { %v1049_v44 = vsel %vm1048_vm9, %v1025_v1, %v1027_v62 }
 0x20a   :  { %v1029_v61 = vpop.permute.xlu0 %1028  ;;  %v1065_v32 = vsel %vm2784_vm10, %v1049_v44, 0.0 }
 0x20b   :  { %v1050_v21 = vsel %vm1048_vm9, %v1027_v62, %v1029_v61  ;;  %v1073_v50 = vadd.f32 %v1065_v32, %v1008_v31 }
 0x20c   :  { %v1066_v20 = vsel %vm2788_vm11, %v1050_v21, 0.0  ;;  %v3107_v21 = vld [vmem:[#allocation6_spill] sm:$0xff] }
 0x20d   :  { %v1074_v43 = vadd.f32 %v1066_v20, %v1009_v2  ;;  %v1081_v30 = vmax.f32 %v1073_v50, 0.0  ;;  %v1002_v2 = vsel %vm2768_vm7, %v986_v5, 0.0 }
 0x20f   :  { %v1082_v34 = vmax.f32 %v1074_v43, 0.0  ;;  %v2800_v36 = vmin.f32 %v1081_v30, 6.0  ;;  %v3108_v30 = vld [vmem:[#allocation9_spill] sm:$0xff] }
 0x211   :  { %v2802_v40 = vmin.f32 %v1082_v34, 6.0  ;;  %v1111_v38 = vrot.slane %v2800_v36, %v2059_v17  ;;  %v1130_v6 = vrot.slane %v2800_v36, %v3103_v49  ;;  %v1149_v60 = vrot.slane %v2800_v36, %v3104_v25 }
 0x212   :  { %v1168_v51 = vrot.slane %v2800_v36, %v3105_v57  ;;  %v1187_v1 = vrot.slane %v2800_v36, %v3106_v56  ;;  %v1206_v50 = vrot.slane %v2800_v36, %v3107_v21  ;;  %v1010_v34 = vadd.f32 %v1002_v2, %v3108_v30 }
 0x213   :  { %v1115_v59 = vrot.slane %v2802_v40, %v2059_v17  ;;  %v1116_v0 = vmul.f32 %v1111_v38, %v1106_v42  ;;  %v1134_v46 = vrot.slane %v2802_v40, %v3103_v49  ;;  %v1135_v18 = vmul.f32 %v1130_v6, %v1125_v10 }
 0x214   :  { %v1153_v39 = vrot.slane %v2802_v40, %v3104_v25  ;;  %v1172_v12 = vrot.slane %v2802_v40, %v3105_v57  ;;  %v1192_v32 = vmul.f32 %v1187_v1, %v2746_v33  ;;  %v1003_v6 = vsel %vm2773_vm8, %v987_v47, 0.0 }
 0x215   :  { %v1117_v13 = vmul.f32 %v1115_v59, %v1106_v42  ;;  %v1118_v48 = vadd.f32 %v1116_v0, %v1100_v23  ;;  %v1136_v27 = vmul.f32 %v1134_v46, %v1125_v10  ;;  %v1154_v42 = vmul.f32 %v1149_v60, %v2742_v41 }
 0x216   :  { %v1173_v10 = vmul.f32 %v1168_v51, %v2744_v63  ;;  %v1174_v44 = vmul.f32 %v1172_v12, %v2744_v63  ;;  %v1210_v59 = vrot.slane %v2802_v40, %v3107_v21 }
 0x217   :  { %v1119_v45 = vadd.f32 %v1117_v13, %v1100_v23  ;;  %v1137_v29 = vadd.f32 %v1135_v18, %v1118_v48  ;;  %v1155_v23 = vmul.f32 %v1153_v39, %v2742_v41  ;;  %v1191_v41 = vrot.slane %v2802_v40, %v3106_v56  ;;  %v3109_v48 = vld [vmem:[#allocation7_spill] sm:$0xff] }
 0x218   :  { %v1211_v13 = vmul.f32 %v1206_v50, %v2748_v4  ;;  %v1225_v46 = vrot.slane %v2800_v36, %v3109_v48  ;;  %v1212_v39 = vmul.f32 %v1210_v59, %v2748_v4  ;;  %v989_v4 = vsel %vm983_vm6, %v2758_v58, %v2760_v19 }
 0x219   :  { %v2814_v35 = vpop.permute.xlu1 %1257  ;;  %v1138_v11 = vadd.f32 %v1136_v27, %v1119_v45  ;;  %v1156_v3 = vadd.f32 %v1154_v42, %v1137_v29  ;;  %v1193_v38 = vmul.f32 %v1191_v41, %v2746_v33  ;;  %v3110_v29 = vld [vmem:[#allocation10_spill] sm:$0xff]  ;;  %v1229_v42 = vrot.slane %v2802_v40, %v3109_v48 }
 0x21a   :  { %v1011_v27 = vadd.f32 %v1003_v6, %v3110_v29  ;;  %v2918_v29 = vsel %vm983_vm6, %v2764_v9, %v2766_v15 }
 0x21b   :  { %v2816_v8 = vpop.permute.xlu0 %1238  ;;  %v1157_v26 = vadd.f32 %v1155_v23, %v1138_v11  ;;  %v1175_v62 = vadd.f32 %v1173_v10, %v1156_v3  ;;  %v1230_v3 = vmul.f32 %v1225_v46, %v2750_v55  ;;  %v988_v10 = vsel %vm983_vm6, %v2756_v24, %v2758_v58 }
 0x21c   :  { %v1004_v24 = vsel %vm2768_vm7, %v988_v10, 0.0 }
 0x21d   :  { %v2823_v7 = vpop.permute.xlu1 %1295  ;;  %v1176_v20 = vadd.f32 %v1174_v44, %v1157_v26  ;;  %v1194_v43 = vadd.f32 %v1192_v32, %v1175_v62  ;;  %v3111_v62 = vld [vmem:[#allocation8_spill] sm:$0xff]  ;;  %v1231_v32 = vmul.f32 %v1229_v42, %v2750_v55 }
 0x21e   :  { %v1244_v44 = vrot.slane %v2800_v36, %v3111_v62  ;;  %v1005_v36 = vsel %vm2773_vm8, %v989_v4, 0.0  ;;  %v1248_v55 = vrot.slane %v2802_v40, %v3111_v62 }
 0x21f   :  { %v2828_v28 = vpop.permute.xlu0 %1276  ;;  %v1195_v14 = vadd.f32 %v1193_v38, %v1176_v20  ;;  %v1213_v60 = vadd.f32 %v1211_v13, %v1194_v43 }
 0x220   :  { %v1249_v20 = vmul.f32 %v1244_v44, %v2816_v8  ;;  %v1250_v13 = vmul.f32 %v1248_v55, %v2816_v8 }
 0x221   :  { %v2835_v31 = vpop.permute.xlu1 %1333  ;;  %v1214_v1 = vadd.f32 %v1212_v39, %v1195_v14  ;;  %v1232_v26 = vadd.f32 %v1230_v3, %v1213_v60  ;;  %v3113_v14 = vld [vmem:[#allocation12_spill] sm:$0xff] }
 0x223   :  { %v2840_v61 = vpop.permute.xlu0 %1314  ;;  %v1233_v43 = vadd.f32 %v1231_v32, %v1214_v1  ;;  %v1251_v30 = vadd.f32 %v1249_v20, %v1232_v26 }
 0x225   :  { %v1031_v63 = vpop.permute.xlu1 %1030  ;;  %v1252_v8 = vadd.f32 %v1250_v13, %v1233_v43 }
 0x227   :  { %v1033_v0 = vpop.permute.xlu0 %1032 }
 0x228   :  { %v1051_v52 = vsel %vm1048_vm9, %v1031_v63, %v1033_v0 }
 0x229   :  { %v1067_v18 = vsel %vm2784_vm10, %v1051_v52, 0.0  ;;  %v1035_v45 = vpop.permute.xlu1 %1034 }
 0x22a   :  { %v1075_v33 = vadd.f32 %v1067_v18, %v1010_v34  ;;  %v1052_v51 = vsel %vm1048_vm9, %v1033_v0, %v1035_v45  ;;  %v3112_v0 = vld [vmem:[#allocation11_spill] sm:$0xff]  ;;  %v1013_v18 = vadd.f32 %v1005_v36, %v3113_v14 }
 0x22b   :  { %v2867_v11 = vpop.permute.xlu0 %1352  ;;  %v1068_v12 = vsel %vm2788_vm11, %v1052_v51, 0.0  ;;  %v1012_v6 = vadd.f32 %v1004_v24, %v3112_v0 }
 0x22c   :  { %v1083_v23 = vmax.f32 %v1075_v33, 0.0  ;;  %v1076_v5 = vadd.f32 %v1068_v12, %v1011_v27 }
 0x22d   :  { %v2882_v2 = vpop.permute.xlu1 %1371 }
 0x22e   :  { %v2880_v41 = vmin.f32 %v1083_v23, 6.0  ;;  %v1084_v50 = vmax.f32 %v1076_v5, 0.0 }
 0x22f   :  { %v2885_v47 = vpop.permute.xlu0 %1390 }
 0x230   :  { %v1263_v58 = vrot.slane %v2880_v41, %v2059_v17  ;;  %v1282_v19 = vrot.slane %v2880_v41, %v3103_v49  ;;  %v2898_v63 = vmin.f32 %v1084_v50, 6.0  ;;  %v1301_v38 = vrot.slane %v2880_v41, %v3104_v25 }
 0x231   :  { %v2903_v59 = vpop.permute.xlu1 %1409  ;;  %v1320_v45 = vrot.slane %v2880_v41, %v3105_v57  ;;  %v1339_v3 = vrot.slane %v2880_v41, %v3106_v56  ;;  %v1358_v23 = vrot.slane %v2880_v41, %v3107_v21 }
 0x232   :  { %v1268_v34 = vmul.f32 %v1263_v58, %v2814_v35  ;;  %v1267_v46 = vrot.slane %v2898_v63, %v2059_v17  ;;  %v1286_v40 = vrot.slane %v2898_v63, %v3103_v49  ;;  %v1287_v33 = vmul.f32 %v1282_v19, %v2828_v28 }
 0x233   :  { %v1037_v52 = vpop.permute.xlu0 %1036  ;;  %v1305_v39 = vrot.slane %v2898_v63, %v3104_v25  ;;  %v1306_v51 = vmul.f32 %v1301_v38, %v2823_v7  ;;  %v1324_v1 = vrot.slane %v2898_v63, %v3105_v57  ;;  %v1325_v26 = vmul.f32 %v1320_v45, %v2840_v61 }
 0x234   :  { %v1270_v60 = vadd.f32 %v1268_v34, %v1251_v30  ;;  %v1269_v27 = vmul.f32 %v1267_v46, %v2814_v35  ;;  %v1288_v9 = vmul.f32 %v1286_v40, %v2828_v28  ;;  %v1377_v35 = vrot.slane %v2880_v41, %v3109_v48 }
 0x235   :  { %v1039_v12 = vpop.permute.xlu1 %1038  ;;  %v1307_v24 = vmul.f32 %v1305_v39, %v2823_v7  ;;  %v1343_v28 = vrot.slane %v2898_v63, %v3106_v56  ;;  %v1344_v19 = vmul.f32 %v1339_v3, %v2835_v31  ;;  %v1326_v34 = vmul.f32 %v1324_v1, %v2840_v61 }
 0x236   :  { %v1289_v42 = vadd.f32 %v1287_v33, %v1270_v60  ;;  %v1271_v10 = vadd.f32 %v1269_v27, %v1252_v8  ;;  %v1053_v44 = vsel %vm1048_vm9, %v1037_v52, %v1039_v12  ;;  %v1362_v7 = vrot.slane %v2898_v63, %v3107_v21 }
 0x237   :  { %v1041_v5 = vpop.permute.xlu0 %1040  ;;  %v1069_v20 = vsel %vm2784_vm10, %v1053_v44, 0.0  ;;  %v1363_v46 = vmul.f32 %v1358_v23, %v2867_v11  ;;  %v1396_v40 = vrot.slane %v2880_v41, %v3111_v62  ;;  %v1345_v14 = vmul.f32 %v1343_v28, %v2835_v31 }
 0x238   :  { %v1308_v4 = vadd.f32 %v1306_v51, %v1289_v42  ;;  %v1054_v32 = vsel %vm1048_vm9, %v1039_v12, %v1041_v5  ;;  %v1290_v50 = vadd.f32 %v1288_v9, %v1271_v10  ;;  %v1077_v36 = vadd.f32 %v1069_v20, %v1012_v6 }
 0x239   :  { %v1070_v43 = vsel %vm2788_vm11, %v1054_v32, 0.0  ;;  %v1448_v55 = vpop.permute.xlu1 %1447  ;;  %v1381_v60 = vrot.slane %v2898_v63, %v3109_v48  ;;  %v991_v61 = vsel %vm983_vm6, %v2766_v15, %v2778_v54  ;;  %v1382_v45 = vmul.f32 %v1377_v35, %v2882_v2 }
 0x23a   :  { %v1327_v58 = vadd.f32 %v1325_v26, %v1308_v4  ;;  %v1309_v30 = vadd.f32 %v1307_v24, %v1290_v50  ;;  %v1078_v38 = vadd.f32 %v1070_v43, %v1013_v18  ;;  %v1085_v52 = vmax.f32 %v1077_v36, 0.0 }
 0x23b   :  { %v1429_v0 = vpop.permute.xlu0 %1428  ;;  %v1364_v41 = vmul.f32 %v1362_v7, %v2867_v11  ;;  %v1400_v31 = vrot.slane %v2898_v63, %v3111_v62  ;;  %v1401_v23 = vmul.f32 %v1396_v40, %v2885_v47  ;;  %v1383_v10 = vmul.f32 %v1381_v60, %v2882_v2 }
 0x23c   :  { %v1346_v13 = vadd.f32 %v1344_v19, %v1327_v58  ;;  %v1328_v6 = vadd.f32 %v1326_v34, %v1309_v30  ;;  %v1086_v33 = vmax.f32 %v1078_v38, 0.0  ;;  %v2957_v8 = vmin.f32 %v1085_v52, 6.0  ;;  %v3115_v30 = vld [vmem:[#allocation14_spill] sm:$0xff] }
 0x23d   :  { %v1486_v27 = vpop.permute.xlu1 %1485  ;;  %v1006_v63 = vsel %vm2768_vm7, %v2918_v29, 0.0  ;;  %v1007_v4 = vsel %vm2773_vm8, %v991_v61, 0.0  ;;  %v1402_v2 = vmul.f32 %v1400_v31, %v2885_v47 }
 0x23e   :  { %v1365_v18 = vadd.f32 %v1363_v46, %v1346_v13  ;;  %v1347_v39 = vadd.f32 %v1345_v14, %v1328_v6  ;;  %v2962_v42 = vmin.f32 %v1086_v33, 6.0  ;;  %v1415_v15 = vrot.slane %v2957_v8, %v2059_v17 }
 0x23f   :  { %v1467_v51 = vpop.permute.xlu0 %1466  ;;  %v1434_v54 = vrot.slane %v2957_v8, %v3103_v49  ;;  %v1453_v1 = vrot.slane %v2957_v8, %v3104_v25  ;;  %v1472_v24 = vrot.slane %v2957_v8, %v3105_v57  ;;  %v1014_v58 = vadd.f32 %v1006_v63, %v3114_v37 }
 0x240   :  { %v1384_v3 = vadd.f32 %v1382_v45, %v1365_v18  ;;  %v1366_v12 = vadd.f32 %v1364_v41, %v1347_v39  ;;  %v1419_v11 = vrot.slane %v2962_v42, %v2059_v17  ;;  %v1420_v35 = vmul.f32 %v1415_v15, %v2903_v59 }
 0x241   :  { %v1524_v5 = vpop.permute.xlu1 %1523  ;;  %v1438_v44 = vrot.slane %v2962_v42, %v3103_v49  ;;  %v1457_v16 = vrot.slane %v2962_v42, %v3104_v25  ;;  %v1439_v50 = vmul.f32 %v1434_v54, %v1429_v0  ;;  %v1458_v19 = vmul.f32 %v1453_v1, %v1448_v55 }
 0x242   :  { %v1403_v9 = vadd.f32 %v1401_v23, %v1384_v3  ;;  %v1385_v26 = vadd.f32 %v1383_v10, %v1366_v12  ;;  %v1421_v20 = vmul.f32 %v1419_v11, %v2903_v59  ;;  %v1491_v47 = vrot.slane %v2957_v8, %v3106_v56 }
 0x243   :  { %v1505_v32 = vpop.permute.xlu0 %1504  ;;  %v1015_v34 = vadd.f32 %v1007_v4, %v3115_v30  ;;  %v1440_v38 = vmul.f32 %v1438_v44, %v1429_v0  ;;  %v1476_v13 = vrot.slane %v2962_v42, %v3105_v57  ;;  %v1459_v40 = vmul.f32 %v1457_v16, %v1448_v55 }
 0x244   :  { %v1422_v29 = vadd.f32 %v1420_v35, %v1403_v9  ;;  %v1404_v28 = vadd.f32 %v1402_v2, %v1385_v26  ;;  %v1477_v6 = vmul.f32 %v1472_v24, %v1467_v51  ;;  %v1495_v60 = vrot.slane %v2962_v42, %v3106_v56 }
 0x245   :  { %v1043_v43 = vpop.permute.xlu1 %1042  ;;  %v1529_v33 = vrot.slane %v2957_v8, %v3109_v48  ;;  %v1496_v0 = vmul.f32 %v1491_v47, %v1486_v27  ;;  %v1510_v45 = vrot.slane %v2957_v8, %v3107_v21  ;;  %v1478_v31 = vmul.f32 %v1476_v13, %v1467_v51 }
 0x246   :  { %v1441_v36 = vadd.f32 %v1439_v50, %v1422_v29  ;;  %v1423_v7 = vadd.f32 %v1421_v20, %v1404_v28  ;;  %v1533_v3 = vrot.slane %v2962_v42, %v3109_v48  ;;  %v1497_v11 = vmul.f32 %v1495_v60, %v1486_v27 }
 0x247   :  { %v1045_v46 = vpop.permute.xlu0 %1044  ;;  %v1515_v12 = vmul.f32 %v1510_v45, %v1505_v32  ;;  %v1514_v9 = vrot.slane %v2962_v42, %v3107_v21  ;;  %v1534_v35 = vmul.f32 %v1529_v33, %v1524_v5  ;;  %v1548_v26 = vrot.slane %v2957_v8, %v3111_v62 }
 0x248   :  { %v1460_v52 = vadd.f32 %v1458_v19, %v1441_v36  ;;  %v1055_v59 = vsel %vm1048_vm9, %v1043_v43, %v1045_v46  ;;  %v1442_v14 = vadd.f32 %v1440_v38, %v1423_v7  ;;  %v1535_v20 = vmul.f32 %v1533_v3, %v1524_v5 }
 0x249   :  { %v1071_v61 = vsel %vm2784_vm10, %v1055_v59, 0.0  ;;  %v1047_v39 = vpop.permute.xlu1 %1046  ;;  %v1516_v16 = vmul.f32 %v1514_v9, %v1505_v32  ;;  %v1552_v19 = vrot.slane %v2962_v42, %v3111_v62 }
 0x24a   :  { %v1479_v18 = vadd.f32 %v1477_v6, %v1460_v52  ;;  %v1079_v55 = vadd.f32 %v1071_v61, %v1014_v58  ;;  %v1461_v41 = vadd.f32 %v1459_v40, %v1442_v14  ;;  %v1056_v23 = vsel %vm1048_vm9, %v1045_v46, %v1047_v39 }
 0x24b   :  { %v1543_v15 = vpop.permute.xlu0 %1542  ;;  %v1072_v53 = vsel %vm2788_vm11, %v1056_v23, 0.0 }
 0x24c   :  { %v1498_v54 = vadd.f32 %v1496_v0, %v1479_v18  ;;  %v1087_v10 = vmax.f32 %v1079_v55, 0.0  ;;  %v1480_v63 = vadd.f32 %v1478_v31, %v1461_v41  ;;  %v1080_v1 = vadd.f32 %v1072_v53, %v1015_v34 }
 0x24d   :  { %v1562_v2 = vpop.permute.xlu1 %1561  ;;  %v1553_v24 = vmul.f32 %v1548_v26, %v1543_v15  ;;  %v1554_v30 = vmul.f32 %v1552_v19, %v1543_v15 }
 0x24e   :  { %v1517_v51 = vadd.f32 %v1515_v12, %v1498_v54  ;;  %v3010_v4 = vmin.f32 %v1087_v10, 6.0  ;;  %v1499_v44 = vadd.f32 %v1497_v11, %v1480_v63  ;;  %v1088_v29 = vmax.f32 %v1080_v1, 0.0 }
 0x24f   :  { %v1581_v50 = vpop.permute.xlu0 %1580 }
 0x250   :  { %v1536_v22 = vadd.f32 %v1534_v35, %v1517_v51  ;;  %v1567_v27 = vrot.slane %v3010_v4, %v2059_v17  ;;  %v1586_v28 = vrot.slane %v3010_v4, %v3103_v49  ;;  %v1518_v37 = vadd.f32 %v1516_v16, %v1499_v44 }
 0x251   :  { %v1096_v58 = vmin.f32 %v1088_v29, 6.0  ;;  %v1605_v32 = vrot.slane %v3010_v4, %v3104_v25  ;;  %v1600_v47 = vpop.permute.xlu1 %1599  ;;  %v1624_v59 = vrot.slane %v3010_v4, %v3105_v57  ;;  %v1643_v18 = vrot.slane %v3010_v4, %v3106_v56 }
 0x252   :  { %v1555_v8 = vadd.f32 %v1553_v24, %v1536_v22  ;;  %v1572_v36 = vmul.f32 %v1567_v27, %v1562_v2  ;;  %v1537_v43 = vadd.f32 %v1535_v20, %v1518_v37  ;;  %v1591_v5 = vmul.f32 %v1586_v28, %v1581_v50 }
 0x253   :  { %v1571_v34 = vrot.slane %v1096_v58, %v2059_v17  ;;  %v1590_v7 = vrot.slane %v1096_v58, %v3103_v49  ;;  %v1619_v38 = vpop.permute.xlu0 %1618  ;;  %v1609_v52 = vrot.slane %v1096_v58, %v3104_v25  ;;  %v1610_v6 = vmul.f32 %v1605_v32, %v1600_v47 }
 0x254   :  { %v1574_v13 = vadd.f32 %v1572_v36, %v1555_v8  ;;  %v1556_v46 = vadd.f32 %v1554_v30, %v1537_v43  ;;  %v1628_v61 = vrot.slane %v1096_v58, %v3105_v57  ;;  %v1629_v49 = vmul.f32 %v1624_v59, %v1619_v38 }
 0x255   :  { %v1573_v40 = vmul.f32 %v1571_v34, %v1562_v2  ;;  %v1638_v14 = vpop.permute.xlu1 %1637  ;;  %v1592_v33 = vmul.f32 %v1590_v7, %v1581_v50  ;;  %v1611_v55 = vmul.f32 %v1609_v52, %v1600_v47  ;;  %v1662_v41 = vrot.slane %v3010_v4, %v3107_v21 }
 0x256   :  { %v1593_v42 = vadd.f32 %v1591_v5, %v1574_v13  ;;  %v1648_v25 = vmul.f32 %v1643_v18, %v1638_v14  ;;  %v1630_v3 = vmul.f32 %v1628_v61, %v1619_v38  ;;  %v1647_v23 = vrot.slane %v1096_v58, %v3106_v56 }
 0x257   :  { %v1575_v60 = vadd.f32 %v1573_v40, %v1556_v46  ;;  %v1657_v17 = vpop.permute.xlu0 %1656  ;;  %v1681_v12 = vrot.slane %v3010_v4, %v3109_v48  ;;  %v1666_v11 = vrot.slane %v1096_v58, %v3107_v21  ;;  %v1700_v35 = vrot.slane %v3010_v4, %v3111_v62  ;;  %v1819_v4 = vld [vmem:[%s3055_s0] sm:$0xff] }
 0x258   :  { %v1612_v0 = vadd.f32 %v1610_v6, %v1593_v42  ;;  %v1667_v57 = vmul.f32 %v1662_v41, %v1657_v17  ;;  %v1649_v53 = vmul.f32 %v1647_v23, %v1638_v14  ;;  %v1685_v56 = vrot.slane %v1096_v58, %v3109_v48  ;;  %v1820_v48 = vld [vmem:[%s3055_s0 + $0x8] sm:$0xff] }
 0x259   :  { %v1594_v45 = vadd.f32 %v1592_v33, %v1575_v60  ;;  %v1676_v15 = vpop.permute.xlu1 %1675  ;;  %v1668_v26 = vmul.f32 %v1666_v11, %v1657_v17  ;;  %v1704_v50 = vrot.slane %v1096_v58, %v3111_v62 }
 0x25a   :  { %v1631_v39 = vadd.f32 %v1629_v49, %v1612_v0  ;;  %v1686_v1 = vmul.f32 %v1681_v12, %v1676_v15  ;;  %v1687_v29 = vmul.f32 %v1685_v56, %v1676_v15 }
 0x25b   :  { %v1613_v31 = vadd.f32 %v1611_v55, %v1594_v45  ;;  %v1695_v63 = vpop.permute.xlu0 %1694 }
 0x25c   :  { %v1650_v54 = vadd.f32 %v1648_v25, %v1631_v39  ;;  %v1705_v44 = vmul.f32 %v1700_v35, %v1695_v63  ;;  %v1706_v27 = vmul.f32 %v1704_v50, %v1695_v63 }
 0x25d   :  { %v1632_v10 = vadd.f32 %v1630_v3, %v1613_v31 }
 0x25e   :  { %v1669_v9 = vadd.f32 %v1667_v57, %v1650_v54 }
 0x25f   :  { %v1651_v51 = vadd.f32 %v1649_v53, %v1632_v10 }
 0x260   :  { %v1688_v2 = vadd.f32 %v1686_v1, %v1669_v9 }
 0x261   :  { %v1670_v16 = vadd.f32 %v1668_v26, %v1651_v51 }
 0x262   :  { %v1707_v22 = vadd.f32 %v1705_v44, %v1688_v2 }
 0x263   :  { %v1689_v24 = vadd.f32 %v1687_v29, %v1670_v16 }
 0x264   :  { %v1709_v21 = vmax.f32 %v1707_v22, 0.0 }
 0x265   :  { %v1708_v28 = vadd.f32 %v1706_v27, %v1689_v24 }
 0x266   :  { %v1711_v20 = vmin.f32 %v1709_v21, 6.0 }
 0x267   :  { %v1710_v37 = vmax.f32 %v1708_v28, 0.0 }
 0x268   :  { %v1713_v19 = vadd.f32 %v1819_v4, %v1711_v20 }
 0x269   :  { %v1712_v8 = vmin.f32 %v1710_v37, 6.0 }
 0x26a   :  { %1715 = vst [vmem:[%s3057_s5] sm:$0xff] %v1713_v19 }
 0x26b   :  { %v1714_v62 = vadd.f32 %v1820_v48, %v1712_v8 }
 0x26d   :  { %1716 = vst [vmem:[%s3057_s5 + $0x8] sm:$0xff] %v1714_v62 }

</bundles_post_ra>
